<compile_context>
chip_gen: v7x
topology: tpu7x:2x2x1
jax: 0.10.0
libtpu: 0.0.40
codegen_flags: <defaults>
</compile_context>

<pallas_src>
import functools

import jax
import jax.numpy as jnp
from jax.experimental import pallas as pl
from jax.experimental.pallas import tpu as pltpu

ROI_BLOCK = 8          # rois handled per grid step (min sublane granularity)
F_PAD = 128            # lane-dense padded output width


# ----------------------------------------------------------------------------- fused kernel

def _ctp_fused_kernel(x_ref, wc_ref, bc_ref, m_ref, w1_ref, b1_ref, w2_ref, b2_ref,
                      o_ref, wide_ref):
    # x_ref : (B*HW, C*T)  bf16      wc_ref: (C*T, Hc)  bf16    bc_ref: (1, Hc)  f32
    # m_ref : (P*RB, B*HW) bf16      w1_ref: (P*Hc, Hc) bf16    b1_ref: (1, Hc)  f32
    # w2_ref: (Hc, F_PAD)  bf16      b2_ref: (1, F_PAD) f32
    # o_ref : (RB, F_PAD)  f32       wide_ref: (RB, P*Hc) f32 VMEM scratch
    hc = wc_ref.shape[1]
    rb = o_ref.shape[0]
    p_bins = m_ref.shape[0] // rb

    # temporal Conv3d (kernel (T,1,1)) + bias + ReLU as one matmul: [BHW, CT] @ [CT, Hc]
    conv = jnp.dot(x_ref[...], wc_ref[...], preferred_element_type=jnp.float32)
    conv = jnp.maximum(conv + bc_ref[...], 0.0).astype(jnp.bfloat16)        # [BHW, Hc]

    # RoIAlign (+ per-roi batch selection) as one interpolation-matrix matmul.
    # M' rows are bin-major within the block: row = p * rb + n_local.
    roi = jnp.dot(m_ref[...], conv, preferred_element_type=jnp.float32)     # [P*RB, Hc]

    # relayout (p-major rows, Hc cols) -> (RB rows, P*Hc cols) via static slice stores
    for p in range(p_bins):
        wide_ref[:, p * hc:(p + 1) * hc] = roi[p * rb:(p + 1) * rb, :]

    # fc1 as a single K = P*Hc matmul, then ReLU.
    wide = wide_ref[...].astype(jnp.bfloat16)                               # [RB, P*Hc]
    h = jnp.dot(wide, w1_ref[...], preferred_element_type=jnp.float32)
    h = jnp.maximum(h + b1_ref[...], 0.0).astype(jnp.bfloat16)              # [RB, Hc]

    # pred_head (lane-dense padded output)
    o_ref[...] = jnp.dot(h, w2_ref[...], preferred_element_type=jnp.float32) + b2_ref[...]


def ctp_fused_call(x_mat, w_conv, b_conv, m_mat, w1, b1, w2, b2, *, n_pad):
    bhw, ct = x_mat.shape
    hc = w_conv.shape[1]
    d = w1.shape[0]                       # P*Hc
    f_pad = w2.shape[1]
    n_blocks = n_pad // ROI_BLOCK
    rows_per_block = m_mat.shape[0] // n_blocks   # P * ROI_BLOCK

    flops = 2 * n_blocks * (bhw * ct * hc                # conv (recomputed per block)
                            + rows_per_block * bhw * hc  # RoIAlign matmul
                            + ROI_BLOCK * d * hc         # fc1
                            + ROI_BLOCK * hc * f_pad)    # pred head
    bytes_accessed = (x_mat.size * 2 + w_conv.size * 2 + m_mat.size * 2
                      + w1.size * 2 + w2.size * 2
                      + b_conv.size * 4 + b1.size * 4 + b2.size * 4
                      + n_pad * f_pad * 4)

    return pl.pallas_call(
        _ctp_fused_kernel,
        out_shape=jax.ShapeDtypeStruct((n_pad, f_pad), jnp.float32),
        grid=(n_blocks,),
        in_specs=[
            pl.BlockSpec((bhw, ct), lambda i: (0, 0)),
            pl.BlockSpec((ct, hc), lambda i: (0, 0)),
            pl.BlockSpec((1, hc), lambda i: (0, 0)),
            pl.BlockSpec((rows_per_block, bhw), lambda i: (i, 0)),
            pl.BlockSpec((d, hc), lambda i: (0, 0)),
            pl.BlockSpec((1, hc), lambda i: (0, 0)),
            pl.BlockSpec((hc, f_pad), lambda i: (0, 0)),
            pl.BlockSpec((1, f_pad), lambda i: (0, 0)),
        ],
        out_specs=pl.BlockSpec((ROI_BLOCK, f_pad), lambda i: (i, 0)),
        scratch_shapes=[pltpu.VMEM((ROI_BLOCK, d), jnp.float32)],
        compiler_params=pltpu.CompilerParams(dimension_semantics=("parallel",)),
        cost_estimate=pl.CostEstimate(flops=int(flops), transcendentals=0,
                                      bytes_accessed=int(bytes_accessed)),
    )(x_mat, w_conv, b_conv, m_mat, w1, b1, w2, b2)


# ----------------------------------------------------------------------------- RoIAlign glue
# torchvision RoIAlign (aligned=True, sampling_ratio=2) sample coordinates / bilinear
# weights.  The weighted gather runs on the MXU inside the fused kernel; here we only
# do the (tiny) index math and a scatter-add that builds the interpolation matrix.
# TODO(synk): at production scale, cache M' across calls with identical rois, or feed
# ws/idxs/bi through scalar prefetch and gather conv rows in-kernel instead of the
# dense ~99%-zero matrix.

def _roi_sample_weights(rois, H, W, pooled, spatial_scale, sampling_ratio=2):
    rois = rois.astype(jnp.float32)
    N = rois.shape[0]
    g = sampling_ratio
    off = 0.5  # aligned=True
    bi = rois[:, 0].astype(jnp.int32)
    x1 = rois[:, 1] * spatial_scale - off
    y1 = rois[:, 2] * spatial_scale - off
    x2 = rois[:, 3] * spatial_scale - off
    y2 = rois[:, 4] * spatial_scale - off
    bin_w = (x2 - x1) / pooled
    bin_h = (y2 - y1) / pooled

    p = jnp.arange(pooled, dtype=jnp.float32)
    s = jnp.arange(g, dtype=jnp.float32)
    ys = y1[:, None, None] + (p[None, :, None] + (s[None, None, :] + 0.5) / g) * bin_h[:, None, None]
    xs = x1[:, None, None] + (p[None, :, None] + (s[None, None, :] + 0.5) / g) * bin_w[:, None, None]
    y = jnp.broadcast_to(ys[:, :, None, :, None], (N, pooled, pooled, g, g))
    x = jnp.broadcast_to(xs[:, None, :, None, :], (N, pooled, pooled, g, g))

    valid = (y >= -1.0) & (y <= H) & (x >= -1.0) & (x <= W)
    y = jnp.clip(y, 0.0, None)
    x = jnp.clip(x, 0.0, None)
    y_low = jnp.floor(y).astype(jnp.int32)
    x_low = jnp.floor(x).astype(jnp.int32)
    y_top = y_low >= H - 1
    x_top = x_low >= W - 1
    y_low = jnp.where(y_top, H - 1, y_low)
    x_low = jnp.where(x_top, W - 1, x_low)
    y_high = jnp.where(y_top, H - 1, y_low + 1)
    x_high = jnp.where(x_top, W - 1, x_low + 1)
    y = jnp.where(y_top, y_low.astype(jnp.float32), y)
    x = jnp.where(x_top, x_low.astype(jnp.float32), x)
    ly = y - y_low.astype(jnp.float32)
    lx = x - x_low.astype(jnp.float32)
    hy = 1.0 - ly
    hx = 1.0 - lx

    scale = jnp.where(valid, 1.0 / (g * g), 0.0)
    ws = jnp.stack([hy * hx, hy * lx, ly * hx, ly * lx], axis=-1) * scale[..., None]
    idxs = jnp.stack([y_low * W + x_low, y_low * W + x_high,
                      y_high * W + x_low, y_high * W + x_high], axis=-1)
    return ws, idxs, bi          # ws/idxs: [N, ph, pw, g, g, 4], bi: [N]


def build_roi_matrix_scatter(ws, idxs, bi, B, HW, pooled, n_pad):
    """Dense interpolation matrix M' [n_pad*P, B*HW].

    Rows are block-structured for the kernel grid: each block of ROI_BLOCK rois
    occupies P*ROI_BLOCK consecutive rows, bin-major within the block:
        row = (n // RB) * P*RB + p * RB + (n % RB).
    Batch selection is folded in via the column index bi[n]*HW + spatial_idx."""
    N = ws.shape[0]
    P = pooled * pooled
    BHW = B * HW
    n = jnp.arange(N)
    p_lin = jnp.arange(pooled)[:, None] * pooled + jnp.arange(pooled)[None, :]     # [ph, pw]
    row = ((n // ROI_BLOCK)[:, None, None] * (P * ROI_BLOCK)
           + p_lin[None, :, :] * ROI_BLOCK
           + (n % ROI_BLOCK)[:, None, None])                                        # [N, ph, pw]
    row = jnp.broadcast_to(row[..., None, None, None], idxs.shape)
    col = bi[:, None, None, None, None, None] * HW + idxs
    lin = (row * BHW + col).reshape(-1)
    m = jnp.zeros((n_pad * P * BHW,), jnp.float32).at[lin].add(ws.reshape(-1))
    return m.reshape(n_pad * P, BHW)


# ----------------------------------------------------------------------------- param prep (one-time)

def prepare_ctp_params(params, *, roi_feat_size):
    """One-time (per-model) weight preprocessing; hoisted off the per-call path."""
    hc_out, c, t = params["conv_w"].shape[:3]
    P = roi_feat_size * roi_feat_size
    f4 = params["pred_w"].shape[0]

    w_conv = params["conv_w"].reshape(hc_out, c * t).T.astype(jnp.bfloat16)         # [CT, Hc]
    b_conv = params["conv_b"].reshape(1, hc_out).astype(jnp.float32)

    # fc1 weight permuted from torch (c, h, w) flatten to the kernel's (h, w, c) flatten
    w1 = params["fc1_w"].reshape(hc_out, hc_out, roi_feat_size, roi_feat_size)
    w1 = jnp.transpose(w1, (2, 3, 1, 0)).reshape(P * hc_out, hc_out).astype(jnp.bfloat16)
    b1 = params["fc1_b"].reshape(1, hc_out).astype(jnp.float32)

    # pred head padded to a lane-dense 128-column output
    w2 = jnp.zeros((hc_out, F_PAD), jnp.bfloat16)
    w2 = w2.at[:, :f4].set(params["pred_w"].T.astype(jnp.bfloat16))
    b2 = jnp.zeros((1, F_PAD), jnp.float32)
    b2 = b2.at[:, :f4].set(params["pred_b"].astype(jnp.float32))

    return dict(w_conv=w_conv, b_conv=b_conv, w1=w1, b1=b1, w2=w2, b2=b2)


# ----------------------------------------------------------------------------- forward

def ctp_head_forward(feats, rois, prepped, *, roi_feat_size, spatial_stride, num_out):
    B, C, T, H, W = feats.shape
    N = rois.shape[0]
    n_pad = max(ROI_BLOCK, ((N + ROI_BLOCK - 1) // ROI_BLOCK) * ROI_BLOCK)

    # temporal conv as matmul inputs (channels-last, (c, t) flattened)
    x_mat = jnp.transpose(feats, (0, 3, 4, 1, 2)).reshape(B * H * W, C * T).astype(jnp.bfloat16)

    # RoIAlign interpolation matrix (scatter-add; batch gather folded into columns)
    ws, idxs, bi = _roi_sample_weights(rois, H, W, roi_feat_size, 1.0 / spatial_stride)
    m_mat = build_roi_matrix_scatter(ws, idxs, bi, B, H * W, roi_feat_size, n_pad)
    m_mat = m_mat.astype(jnp.bfloat16)

    preds = ctp_fused_call(x_mat, prepped["w_conv"], prepped["b_conv"], m_mat,
                           prepped["w1"], prepped["b1"], prepped["w2"], prepped["b2"],
                           n_pad=n_pad)
    return preds[:N, :num_out]


# ----------------------------------------------------------------------------- pure-JAX reference

def ctp_head_reference(feats, rois, params, *, roi_feat_size, spatial_stride, sampling_ratio=2):
    B, C, T, H, W = feats.shape
    Hc = params["conv_w"].shape[0]
    N = rois.shape[0]
    conv = jnp.einsum("bcthw,oct->bohw", feats, params["conv_w"][..., 0, 0])
    conv = jnp.maximum(conv + params["conv_b"][None, :, None, None], 0.0)          # [B,Hc,H,W]

    ws, idxs, bi = _roi_sample_weights(rois, H, W, roi_feat_size, 1.0 / spatial_stride,
                                       sampling_ratio=sampling_ratio)
    fmap = conv[bi].reshape(N, Hc, H * W)                                          # [N,Hc,HW]
    flat_idx = jnp.broadcast_to(idxs.reshape(N, 1, -1), (N, Hc, idxs.size // N))
    samples = jnp.take_along_axis(fmap, flat_idx, axis=2)
    samples = samples.reshape((N, Hc) + ws.shape[1:])                              # [N,Hc,ph,pw,g,g,4]
    rf = jnp.sum(samples * ws[:, None], axis=(4, 5, 6))                            # [N,Hc,ph,pw]
    fc_in = rf.reshape(N, -1)                                                      # (c,h,w) flatten
    h1 = jnp.maximum(fc_in @ params["fc1_w"].T + params["fc1_b"], 0.0)
    return h1 @ params["pred_w"].T + params["pred_b"]


# ----------------------------------------------------------------------------- main

if __name__ == "__main__":
    # CtPHead(in_channels=4, hidden_channels=32, in_temporal_size=8,
    #         roi_feat_size=4, spatial_stride=2.0, num_pred_frames=4)
    B, C, T, H, W = 2, 4, 8, 16, 16
    hidden, roi_feat_size, spatial_stride, num_pred_frames = 32, 4, 2.0, 4
    P = roi_feat_size * roi_feat_size
    N_rois = 12                      # 6 rois per image -> n_pad=16 -> 2 grid blocks

    key = jax.random.PRNGKey(0)
    ks = jax.random.split(key, 10)
    params = {
        "conv_w": jax.random.normal(ks[0], (hidden, C, T, 1, 1), jnp.float32) * 0.05,
        "conv_b": jax.random.normal(ks[1], (hidden,), jnp.float32) * 0.01,
        "fc1_w":  jax.random.normal(ks[2], (hidden, hidden * P), jnp.float32) * 0.02,
        "fc1_b":  jax.random.normal(ks[3], (hidden,), jnp.float32) * 0.01,
        "pred_w": jax.random.normal(ks[4], (num_pred_frames * 4, hidden), jnp.float32) * 0.02,
        "pred_b": jax.random.normal(ks[5], (num_pred_frames * 4,), jnp.float32) * 0.01,
    }

    feats = jax.random.normal(ks[6], (B, C, T, H, W), jnp.float32)
    bidx = jnp.concatenate([jnp.zeros((6, 1), jnp.float32), jnp.ones((6, 1), jnp.float32)], axis=0)
    xy1 = jax.random.uniform(ks[7], (N_rois, 2), minval=0.0, maxval=20.0)
    wh = jax.random.uniform(ks[8], (N_rois, 2), minval=4.0, maxval=12.0)
    rois = jnp.concatenate([bidx, xy1, xy1 + wh], axis=1)                          # [N, 5]

    prepped = prepare_ctp_params(params, roi_feat_size=roi_feat_size)              # one-time prep

    fwd = jax.jit(functools.partial(ctp_head_forward, roi_feat_size=roi_feat_size,
                                    spatial_stride=spatial_stride,
                                    num_out=num_pred_frames * 4))
    preds = jax.block_until_ready(fwd(feats, rois, prepped))
    assert preds.shape == (N_rois, num_pred_frames * 4)

    ref = jax.block_until_ready(
        ctp_head_reference(feats, rois, params, roi_feat_size=roi_feat_size,
                           spatial_stride=spatial_stride))
    assert jnp.allclose(preds, ref, rtol=1e-2, atol=1e-2), (
        f"max abs err {jnp.max(jnp.abs(preds - ref))}")

    print("KERNEL_OK")
</pallas_src>

<mosaic_0001>
module attributes {stable_mosaic.version = 11 : i64} {
  func.func private @main(%arg0: i32) attributes {dimension_semantics = [#tpu.dimension_semantics<core_parallel>], iteration_bounds = array<i64: 2>, tpu.core_type = #tpu.core_type<sc_scalar_subcore>, window_params = []} {
    return
  }
}

module attributes {stable_mosaic.version = 11 : i64} {
  func.func private @main(%arg0: i32) attributes {dimension_semantics = [#tpu.dimension_semantics<core_parallel>], iteration_bounds = array<i64: 2>, tpu.core_type = #tpu.core_type<sc_scalar_subcore>, window_params = []} {
    return
  }
}

module attributes {stable_mosaic.version = 11 : i64} {
  func.func @_ctp_fused_kernel(%arg0: i32, %arg1: memref<512x32xbf16, #tpu.memory_space<vmem>>, %arg2: memref<32x32xbf16, #tpu.memory_space<vmem>>, %arg3: memref<1x32xf32, #tpu.memory_space<vmem>>, %arg4: memref<128x512xbf16, #tpu.memory_space<vmem>>, %arg5: memref<512x32xbf16, #tpu.memory_space<vmem>>, %arg6: memref<1x32xf32, #tpu.memory_space<vmem>>, %arg7: memref<32x128xbf16, #tpu.memory_space<vmem>>, %arg8: memref<1x128xf32, #tpu.memory_space<vmem>>, %arg9: memref<8x128xf32, #tpu.memory_space<vmem>>, %arg10: memref<8x512xf32, #tpu.memory_space<vmem>>) attributes {dimension_semantics = [#tpu.dimension_semantics<parallel>], iteration_bounds = array<i64: 2>, scalar_prefetch = 0 : i64, scratch_operands = 1 : i64, tpu.core_type = #tpu.core_type<tc>, window_params = [{pipeline_mode = #tpu.pipeline_mode<synchronous>, transform_indices = @transform_0, window_bounds = array<i64: 512, 32>}, {pipeline_mode = #tpu.pipeline_mode<synchronous>, transform_indices = @transform_1, window_bounds = array<i64: 32, 32>}, {pipeline_mode = #tpu.pipeline_mode<synchronous>, transform_indices = @transform_2, window_bounds = array<i64: 1, 32>}, {transform_indices = @transform_3, window_bounds = array<i64: 128, 512>}, {pipeline_mode = #tpu.pipeline_mode<synchronous>, transform_indices = @transform_4, window_bounds = array<i64: 512, 32>}, {pipeline_mode = #tpu.pipeline_mode<synchronous>, transform_indices = @transform_5, window_bounds = array<i64: 1, 32>}, {pipeline_mode = #tpu.pipeline_mode<synchronous>, transform_indices = @transform_6, window_bounds = array<i64: 32, 128>}, {pipeline_mode = #tpu.pipeline_mode<synchronous>, transform_indices = @transform_7, window_bounds = array<i64: 1, 128>}, {transform_indices = @transform_8, window_bounds = array<i64: 8, 128>}]} {
    %c0 = arith.constant 0 : index
    %c0_0 = arith.constant 0 : index
    %0 = vector.load %arg1[%c0, %c0_0] : memref<512x32xbf16, #tpu.memory_space<vmem>>, vector<512x32xbf16>
    %c0_1 = arith.constant 0 : index
    %c0_2 = arith.constant 0 : index
    %1 = vector.load %arg2[%c0_1, %c0_2] : memref<32x32xbf16, #tpu.memory_space<vmem>>, vector<32x32xbf16>
    %cst = arith.constant dense<0.000000e+00> : vector<512x32xf32>
    %2 = tpu.matmul %0, %1, %cst {dimension_numbers = #tpu.dot_dimension_numbers<[1], [0], [0], [1], [0, 0, 1, 1], [], []>} : vector<512x32xbf16>, vector<32x32xbf16>, vector<512x32xf32> -> vector<512x32xf32>
    %c0_3 = arith.constant 0 : index
    %c0_4 = arith.constant 0 : index
    %3 = vector.load %arg3[%c0_3, %c0_4] : memref<1x32xf32, #tpu.memory_space<vmem>>, vector<1x32xf32>
    %4 = vector.broadcast %3 : vector<1x32xf32> to vector<512x32xf32>
    %5 = arith.addf %2, %4 : vector<512x32xf32>
    %cst_5 = arith.constant 0.000000e+00 : f32
    %6 = vector.broadcast %cst_5 : f32 to vector<512x32xf32>
    %7 = arith.maximumf %5, %6 : vector<512x32xf32>
    %8 = arith.truncf %7 : vector<512x32xf32> to vector<512x32xbf16>
    %c0_6 = arith.constant 0 : index
    %c0_7 = arith.constant 0 : index
    %9 = vector.load %arg4[%c0_6, %c0_7] : memref<128x512xbf16, #tpu.memory_space<vmem>>, vector<128x512xbf16>
    %cst_8 = arith.constant dense<0.000000e+00> : vector<128x32xf32>
    %10 = tpu.matmul %9, %8, %cst_8 {dimension_numbers = #tpu.dot_dimension_numbers<[1], [0], [0], [1], [0, 0, 1, 1], [], []>} : vector<128x512xbf16>, vector<512x32xbf16>, vector<128x32xf32> -> vector<128x32xf32>
    %11 = vector.extract_strided_slice %10 {offsets = [0, 0], sizes = [8, 32], strides = [1, 1]} : vector<128x32xf32> to vector<8x32xf32>
    %c0_9 = arith.constant 0 : index
    %c0_10 = arith.constant 0 : index
    %12 = vector.load %arg10[%c0_9, %c0_10] : memref<8x512xf32, #tpu.memory_space<vmem>>, vector<8x32xf32>
    tpu.vector_store %arg10[%c0_9, %c0_10], %11 {strides = array<i32>} : memref<8x512xf32, #tpu.memory_space<vmem>>, vector<8x32xf32>,
    %13 = vector.extract_strided_slice %10 {offsets = [8, 0], sizes = [8, 32], strides = [1, 1]} : vector<128x32xf32> to vector<8x32xf32>
    %c0_11 = arith.constant 0 : index
    %c32 = arith.constant 32 : index
    %14 = vector.load %arg10[%c0_11, %c32] : memref<8x512xf32, #tpu.memory_space<vmem>>, vector<8x32xf32>
    tpu.vector_store %arg10[%c0_11, %c32], %13 {strides = array<i32>} : memref<8x512xf32, #tpu.memory_space<vmem>>, vector<8x32xf32>,
    %15 = vector.extract_strided_slice %10 {offsets = [16, 0], sizes = [8, 32], strides = [1, 1]} : vector<128x32xf32> to vector<8x32xf32>
    %c0_12 = arith.constant 0 : index
    %c64 = arith.constant 64 : index
    %16 = vector.load %arg10[%c0_12, %c64] : memref<8x512xf32, #tpu.memory_space<vmem>>, vector<8x32xf32>
    tpu.vector_store %arg10[%c0_12, %c64], %15 {strides = array<i32>} : memref<8x512xf32, #tpu.memory_space<vmem>>, vector<8x32xf32>,
    %17 = vector.extract_strided_slice %10 {offsets = [24, 0], sizes = [8, 32], strides = [1, 1]} : vector<128x32xf32> to vector<8x32xf32>
    %c0_13 = arith.constant 0 : index
    %c96 = arith.constant 96 : index
    %18 = vector.load %arg10[%c0_13, %c96] : memref<8x512xf32, #tpu.memory_space<vmem>>, vector<8x32xf32>
    tpu.vector_store %arg10[%c0_13, %c96], %17 {strides = array<i32>} : memref<8x512xf32, #tpu.memory_space<vmem>>, vector<8x32xf32>,
    %19 = vector.extract_strided_slice %10 {offsets = [32, 0], sizes = [8, 32], strides = [1, 1]} : vector<128x32xf32> to vector<8x32xf32>
    %c0_14 = arith.constant 0 : index
    %c128 = arith.constant 128 : index
    %20 = vector.load %arg10[%c0_14, %c128] : memref<8x512xf32, #tpu.memory_space<vmem>>, vector<8x32xf32>
    tpu.vector_store %arg10[%c0_14, %c128], %19 {strides = array<i32>} : memref<8x512xf32, #tpu.memory_space<vmem>>, vector<8x32xf32>,
    %21 = vector.extract_strided_slice %10 {offsets = [40, 0], sizes = [8, 32], strides = [1, 1]} : vector<128x32xf32> to vector<8x32xf32>
    %c0_15 = arith.constant 0 : index
    %c160 = arith.constant 160 : index
    %22 = vector.load %arg10[%c0_15, %c160] : memref<8x512xf32, #tpu.memory_space<vmem>>, vector<8x32xf32>
    tpu.vector_store %arg10[%c0_15, %c160], %21 {strides = array<i32>} : memref<8x512xf32, #tpu.memory_space<vmem>>, vector<8x32xf32>,
    %23 = vector.extract_strided_slice %10 {offsets = [48, 0], sizes = [8, 32], strides = [1, 1]} : vector<128x32xf32> to vector<8x32xf32>
    %c0_16 = arith.constant 0 : index
    %c192 = arith.constant 192 : index
    %24 = vector.load %arg10[%c0_16, %c192] : memref<8x512xf32, #tpu.memory_space<vmem>>, vector<8x32xf32>
    tpu.vector_store %arg10[%c0_16, %c192], %23 {strides = array<i32>} : memref<8x512xf32, #tpu.memory_space<vmem>>, vector<8x32xf32>,
    %25 = vector.extract_strided_slice %10 {offsets = [56, 0], sizes = [8, 32], strides = [1, 1]} : vector<128x32xf32> to vector<8x32xf32>
    %c0_17 = arith.constant 0 : index
    %c224 = arith.constant 224 : index
    %26 = vector.load %arg10[%c0_17, %c224] : memref<8x512xf32, #tpu.memory_space<vmem>>, vector<8x32xf32>
    tpu.vector_store %arg10[%c0_17, %c224], %25 {strides = array<i32>} : memref<8x512xf32, #tpu.memory_space<vmem>>, vector<8x32xf32>,
    %27 = vector.extract_strided_slice %10 {offsets = [64, 0], sizes = [8, 32], strides = [1, 1]} : vector<128x32xf32> to vector<8x32xf32>
    %c0_18 = arith.constant 0 : index
    %c256 = arith.constant 256 : index
    %28 = vector.load %arg10[%c0_18, %c256] : memref<8x512xf32, #tpu.memory_space<vmem>>, vector<8x32xf32>
    tpu.vector_store %arg10[%c0_18, %c256], %27 {strides = array<i32>} : memref<8x512xf32, #tpu.memory_space<vmem>>, vector<8x32xf32>,
    %29 = vector.extract_strided_slice %10 {offsets = [72, 0], sizes = [8, 32], strides = [1, 1]} : vector<128x32xf32> to vector<8x32xf32>
    %c0_19 = arith.constant 0 : index
    %c288 = arith.constant 288 : index
    %30 = vector.load %arg10[%c0_19, %c288] : memref<8x512xf32, #tpu.memory_space<vmem>>, vector<8x32xf32>
    tpu.vector_store %arg10[%c0_19, %c288], %29 {strides = array<i32>} : memref<8x512xf32, #tpu.memory_space<vmem>>, vector<8x32xf32>,
    %31 = vector.extract_strided_slice %10 {offsets = [80, 0], sizes = [8, 32], strides = [1, 1]} : vector<128x32xf32> to vector<8x32xf32>
    %c0_20 = arith.constant 0 : index
    %c320 = arith.constant 320 : index
    %32 = vector.load %arg10[%c0_20, %c320] : memref<8x512xf32, #tpu.memory_space<vmem>>, vector<8x32xf32>
    tpu.vector_store %arg10[%c0_20, %c320], %31 {strides = array<i32>} : memref<8x512xf32, #tpu.memory_space<vmem>>, vector<8x32xf32>,
    %33 = vector.extract_strided_slice %10 {offsets = [88, 0], sizes = [8, 32], strides = [1, 1]} : vector<128x32xf32> to vector<8x32xf32>
    %c0_21 = arith.constant 0 : index
    %c352 = arith.constant 352 : index
    %34 = vector.load %arg10[%c0_21, %c352] : memref<8x512xf32, #tpu.memory_space<vmem>>, vector<8x32xf32>
    tpu.vector_store %arg10[%c0_21, %c352], %33 {strides = array<i32>} : memref<8x512xf32, #tpu.memory_space<vmem>>, vector<8x32xf32>,
    %35 = vector.extract_strided_slice %10 {offsets = [96, 0], sizes = [8, 32], strides = [1, 1]} : vector<128x32xf32> to vector<8x32xf32>
    %c0_22 = arith.constant 0 : index
    %c384 = arith.constant 384 : index
    %36 = vector.load %arg10[%c0_22, %c384] : memref<8x512xf32, #tpu.memory_space<vmem>>, vector<8x32xf32>
    tpu.vector_store %arg10[%c0_22, %c384], %35 {strides = array<i32>} : memref<8x512xf32, #tpu.memory_space<vmem>>, vector<8x32xf32>,
    %37 = vector.extract_strided_slice %10 {offsets = [104, 0], sizes = [8, 32], strides = [1, 1]} : vector<128x32xf32> to vector<8x32xf32>
    %c0_23 = arith.constant 0 : index
    %c416 = arith.constant 416 : index
    %38 = vector.load %arg10[%c0_23, %c416] : memref<8x512xf32, #tpu.memory_space<vmem>>, vector<8x32xf32>
    tpu.vector_store %arg10[%c0_23, %c416], %37 {strides = array<i32>} : memref<8x512xf32, #tpu.memory_space<vmem>>, vector<8x32xf32>,
    %39 = vector.extract_strided_slice %10 {offsets = [112, 0], sizes = [8, 32], strides = [1, 1]} : vector<128x32xf32> to vector<8x32xf32>
    %c0_24 = arith.constant 0 : index
    %c448 = arith.constant 448 : index
    %40 = vector.load %arg10[%c0_24, %c448] : memref<8x512xf32, #tpu.memory_space<vmem>>, vector<8x32xf32>
    tpu.vector_store %arg10[%c0_24, %c448], %39 {strides = array<i32>} : memref<8x512xf32, #tpu.memory_space<vmem>>, vector<8x32xf32>,
    %41 = vector.extract_strided_slice %10 {offsets = [120, 0], sizes = [8, 32], strides = [1, 1]} : vector<128x32xf32> to vector<8x32xf32>
    %c0_25 = arith.constant 0 : index
    %c480 = arith.constant 480 : index
    %42 = vector.load %arg10[%c0_25, %c480] : memref<8x512xf32, #tpu.memory_space<vmem>>, vector<8x32xf32>
    tpu.vector_store %arg10[%c0_25, %c480], %41 {strides = array<i32>} : memref<8x512xf32, #tpu.memory_space<vmem>>, vector<8x32xf32>,
    %c0_26 = arith.constant 0 : index
    %c0_27 = arith.constant 0 : index
    %43 = vector.load %arg10[%c0_26, %c0_27] : memref<8x512xf32, #tpu.memory_space<vmem>>, vector<8x512xf32>
    %44 = arith.truncf %43 : vector<8x512xf32> to vector<8x512xbf16>
    %c0_28 = arith.constant 0 : index
    %c0_29 = arith.constant 0 : index
    %45 = vector.load %arg5[%c0_28, %c0_29] : memref<512x32xbf16, #tpu.memory_space<vmem>>, vector<512x32xbf16>
    %cst_30 = arith.constant dense<0.000000e+00> : vector<8x32xf32>
    %46 = tpu.matmul %44, %45, %cst_30 {dimension_numbers = #tpu.dot_dimension_numbers<[1], [0], [0], [1], [0, 0, 1, 1], [], []>} : vector<8x512xbf16>, vector<512x32xbf16>, vector<8x32xf32> -> vector<8x32xf32>
    %c0_31 = arith.constant 0 : index
    %c0_32 = arith.constant 0 : index
    %47 = vector.load %arg6[%c0_31, %c0_32] : memref<1x32xf32, #tpu.memory_space<vmem>>, vector<1x32xf32>
    %48 = vector.broadcast %47 : vector<1x32xf32> to vector<8x32xf32>
    %49 = arith.addf %46, %48 : vector<8x32xf32>
    %cst_33 = arith.constant 0.000000e+00 : f32
    %50 = vector.broadcast %cst_33 : f32 to vector<8x32xf32>
    %51 = arith.maximumf %49, %50 : vector<8x32xf32>
    %52 = arith.truncf %51 : vector<8x32xf32> to vector<8x32xbf16>
    %c0_34 = arith.constant 0 : index
    %c0_35 = arith.constant 0 : index
    %53 = vector.load %arg7[%c0_34, %c0_35] : memref<32x128xbf16, #tpu.memory_space<vmem>>, vector<32x128xbf16>
    %cst_36 = arith.constant dense<0.000000e+00> : vector<8x128xf32>
    %54 = tpu.matmul %52, %53, %cst_36 {dimension_numbers = #tpu.dot_dimension_numbers<[1], [0], [0], [1], [0, 0, 1, 1], [], []>} : vector<8x32xbf16>, vector<32x128xbf16>, vector<8x128xf32> -> vector<8x128xf32>
    %c0_37 = arith.constant 0 : index
    %c0_38 = arith.constant 0 : index
    %55 = vector.load %arg8[%c0_37, %c0_38] : memref<1x128xf32, #tpu.memory_space<vmem>>, vector<1x128xf32>
    %56 = vector.broadcast %55 : vector<1x128xf32> to vector<8x128xf32>
    %57 = arith.addf %54, %56 : vector<8x128xf32>
    %c0_39 = arith.constant 0 : index
    %c0_40 = arith.constant 0 : index
    %58 = vector.load %arg9[%c0_39, %c0_40] : memref<8x128xf32, #tpu.memory_space<vmem>>, vector<8x128xf32>
    tpu.vector_store %arg9[%c0_39, %c0_40], %57 {strides = array<i32>} : memref<8x128xf32, #tpu.memory_space<vmem>>, vector<8x128xf32>,
    return
  }
  func.func @transform_0(%arg0: i32) -> (i32, i32) {
    %c0_i32 = arith.constant 0 : i32
    %c0_i32_0 = arith.constant 0 : i32
    %c0_i32_1 = arith.constant 0 : i32
    return %c0_i32, %c0_i32_0 : i32, i32
  }
  func.func @transform_1(%arg0: i32) -> (i32, i32) {
    %c0_i32 = arith.constant 0 : i32
    %c0_i32_0 = arith.constant 0 : i32
    %c0_i32_1 = arith.constant 0 : i32
    return %c0_i32, %c0_i32_0 : i32, i32
  }
  func.func @transform_2(%arg0: i32) -> (i32, i32) {
    %c0_i32 = arith.constant 0 : i32
    %c0_i32_0 = arith.constant 0 : i32
    %c0_i32_1 = arith.constant 0 : i32
    return %c0_i32, %c0_i32_0 : i32, i32
  }
  func.func @transform_3(%arg0: i32) -> (i32, i32) {
    %c0_i32 = arith.constant 0 : i32
    %c0_i32_0 = arith.constant 0 : i32
    return %arg0, %c0_i32 : i32, i32
  }
  func.func @transform_4(%arg0: i32) -> (i32, i32) {
    %c0_i32 = arith.constant 0 : i32
    %c0_i32_0 = arith.constant 0 : i32
    %c0_i32_1 = arith.constant 0 : i32
    return %c0_i32, %c0_i32_0 : i32, i32
  }
  func.func @transform_5(%arg0: i32) -> (i32, i32) {
    %c0_i32 = arith.constant 0 : i32
    %c0_i32_0 = arith.constant 0 : i32
    %c0_i32_1 = arith.constant 0 : i32
    return %c0_i32, %c0_i32_0 : i32, i32
  }
  func.func @transform_6(%arg0: i32) -> (i32, i32) {
    %c0_i32 = arith.constant 0 : i32
    %c0_i32_0 = arith.constant 0 : i32
    %c0_i32_1 = arith.constant 0 : i32
    return %c0_i32, %c0_i32_0 : i32, i32
  }
  func.func @transform_7(%arg0: i32) -> (i32, i32) {
    %c0_i32 = arith.constant 0 : i32
    %c0_i32_0 = arith.constant 0 : i32
    %c0_i32_1 = arith.constant 0 : i32
    return %c0_i32, %c0_i32_0 : i32, i32
  }
  func.func @transform_8(%arg0: i32) -> (i32, i32) {
    %c0_i32 = arith.constant 0 : i32
    %c0_i32_0 = arith.constant 0 : i32
    return %arg0, %c0_i32 : i32, i32
  }
}

</mosaic_0001>

<bundles_post_ra>
// kernel: ctp_head_forward.1
= control target key start
LH: loop header
LB: loop body
LE: loop exit
PB: predicated region body
PF: predicated region fallthrough
CT: control target
= control target key end

     0   :  { %13 = vsyncpa [#allocation4], 0  ;;  %s3260_s0 = inlined_call_operand.vmem [shape: bf16[512,32], index: 0, kind: input, shape index: {}]   ;;  %s3261_s1 = inlined_call_operand.vmem [shape: bf16[32,32], index: 1, kind: input, shape index: {}]   ;;  %s3262_s2 = inlined_call_operand.vmem [shape: f32[1,32], index: 2, kind: input, shape index: {}]   ;;  %s3263_s3 = inlined_call_operand.vmem [shape: bf16[256,512], index: 3, kind: input, shape index: {}]   ;;  %s3264_s4 = inlined_call_operand.vmem [shape: bf16[512,32], index: 4, kind: input, shape index: {}]   ;;  %s3265_s5 = inlined_call_operand.vmem [shape: f32[1,32], index: 5, kind: input, shape index: {}]   ;;  %s3266_s6 = inlined_call_operand.vmem [shape: bf16[32,128], index: 6, kind: input, shape index: {}]   ;;  %s3267_s7 = inlined_call_operand.vmem [shape: f32[1,128], index: 7, kind: input, shape index: {}]   ;;  %s3268_s8 = inlined_call_operand.hbm [shape: f32[16,128], index: 8, kind: output, shape index: {}]  }
   0x1   :  { %15 = vsyncpa [#allocation4 + $0x1], 0  ;;  %s2694_s27 = smov 0   ;;  %s2696_s28 = smov 0  }
   0x2   :  { %s2698_s29 = smov 0   ;;  %s2700_s30 = smov 0  }
   0x3 LB: > { %s2715_s9 = sadd.s32 4294967295, %s2641_s30   ;;  %s1985_s10 = sadd.s32 4294967294, %s2641_s30   ;;  %s2641_s30 = sphi %s2700_s30, %s3274_s30   ;;  %s2637_s29 = sphi %s2698_s29, %s3273_s29   ;;  %s2633_s28 = sphi %s2696_s28, %s3272_s28   ;;  %s2629_s27 = sphi %s2694_s27, %s3271_s27  }
   0x4   : > { %s2719_s11 = sadd.s32 1, %s2641_s30   ;;  %s201_s12 = sadd.s32 1, %s2637_s29 }
   0x5   : > { %s198_s13 = ssub.s32 %s2641_s30, %s2719_s11  ;;  %p211_p0 = scmp.ne.s32.totalorder %s2637_s29, %s2633_s28 }
   0x6   : > { %p199_p1 = scmp.eq.s32.totalorder %s198_s13, 0  ;;  %p212_p2 = scmp.eq.s32.totalorder %s2715_s9, 1 }
   0x7   : > { %p217_p3 = scmp.ne.s32.totalorder %s2633_s28, %s2629_s27  ;;  %p218_p4 = scmp.eq.s32.totalorder %s1985_s10, 1 }
   0x8   : > { %s2730_s14 = scalar_select %p199_p1, %s2637_s29, %s201_s12  }
   0x9   : > { %p2732_p5 = por %p212_p2, %p211_p0  ;;  %p2736_p6 = por %p218_p4, %p217_p3 }
   0xa   : > { %p1988_p7 = scmp.ge.s32.totalorder %s2641_s30, 1  ;;  %p267_p8 = scmp.lt.s32.totalorder %s2641_s30, 3 }
   0xc   : > { %p268_p9 = pnand %p1988_p7, %p267_p8 }
   0xd   : > { %v2463_v0 = vld [vmem:[%s3261_s1] sm:$0xff] (!%p268_p9)   ;;  %v2464_v1 = vld [vmem:[%s3261_s1 + $0x8] sm:$0xff] (!%p268_p9)   ;;  %vm557_vm0 = vcmask (!%p268_p9), 261120   ;;  %v2467_v4 = vld [vmem:[%s3260_s0 + $0x10] sm:$0xff] (!%p268_p9)   ;;  %s1990_s20 = sshll.u32 (!%p268_p9), %s2715_s9, 4  ;;  %s2643_s12 = smov (!%p268_p9), 32  }
   0xe   : > { %271 = sbr.rel (%p268_p9) target bundleno = 1223 (0x4c7), region = 52  ;;  %2343 = vmatprep.subr.bf16.mxu0 (!%p268_p9), %v2463_v0  ;;  %v2465_v2 = vld [vmem:[%s3260_s0] sm:$0xff] (!%p268_p9)   ;;  %v2466_v3 = vld [vmem:[%s3260_s0 + $0x8] sm:$0xff] (!%p268_p9)   ;;  %v2468_v5 = vld [vmem:[%s3260_s0 + $0x18] sm:$0xff] (!%p268_p9)   ;;  %p303_p10 = scmp.lt.s32.totalorder (!%p268_p9), %s1990_s20, 31  ;;  %vm1430_vm1 = vcmask (!%p268_p9), 523520  }
   0xf   : > { %2344 = vmatpush3.bf16.msra.mxu0 (!%p268_p9), %v2463_v0  ;;  %2347 = vmatprep.mubr.msk.bf16.mxu0 (!%p268_p9), %vm557_vm0, %v2465_v2  ;;  %v2469_v6 = vld [vmem:[%s3260_s0 + $0x20] sm:$0xff] (!%p268_p9)   ;;  %v2470_v7 = vld [vmem:[%s3260_s0 + $0x28] sm:$0xff] (!%p268_p9)   ;;  %v2471_v8 = vld [vmem:[%s3260_s0 + $0x30] sm:$0xff] (!%p268_p9)   ;;  %s2644_s22 = smov (!%p268_p9), 64   ;;  %s2645_s23 = smov (!%p268_p9), 96   ;;  %vm1436_vm2 = vcmask (!%p268_p9), 785920  }
  0x10   : > { %2345 = vmatprep.subr.bf16.mxu0 (!%p268_p9), %v2464_v1  ;;  %v2472_v9 = vld [vmem:[%s3260_s0 + $0x38] sm:$0xff] (!%p268_p9)   ;;  %v2473_v10 = vld [vmem:[%s3260_s0 + $0x40] sm:$0xff] (!%p268_p9)   ;;  %v2474_v11 = vld [vmem:[%s3260_s0 + $0x48] sm:$0xff] (!%p268_p9)   ;;  %vm1442_vm3 = vcmask (!%p268_p9), 1048320   ;;  %vm2647_vm4 = vmmov (!%p268_p9), 0   ;;  %s299_s19 = sand.u32 (!%p268_p9), 1, %s2633_s28  }
  0x11   : > { %v2475_v12 = vld [vmem:[%s3260_s0 + $0x50] sm:$0xff] (!%p268_p9)   ;;  %v2476_v13 = vld [vmem:[%s3260_s0 + $0x58] sm:$0xff] (!%p268_p9)   ;;  %v2477_v14 = vld [vmem:[%s3260_s0 + $0x60] sm:$0xff] (!%p268_p9)   ;;  %s2130_s25 = sshll.u32 (!%p268_p9), %s2715_s9, 7  ;;  %s1913_s13 = scalar_lea.sflag (!%p268_p9), [#allocation4], %s299_s19 }
  0x12   : > { %v2478_v15 = vld [vmem:[%s3260_s0 + $0x68] sm:$0xff] (!%p268_p9)   ;;  %v2479_v16 = vld [vmem:[%s3260_s0 + $0x70] sm:$0xff] (!%p268_p9)   ;;  %v2480_v17 = vld [vmem:[%s3260_s0 + $0x78] sm:$0xff] (!%p268_p9)   ;;  %s2648_s17 = smov (!%p268_p9), [#allocation3]  }
  0x13   : > { %2346 = vmatpush3.bf16.msra.mxu0 (!%p268_p9), %v2464_v1  ;;  %v2481_v18 = vld [vmem:[%s3260_s0 + $0x80] sm:$0xff] (!%p268_p9)   ;;  %v2482_v19 = vld [vmem:[%s3260_s0 + $0x88] sm:$0xff] (!%p268_p9)   ;;  %v2483_v20 = vld [vmem:[%s3260_s0 + $0x90] sm:$0xff] (!%p268_p9)   ;;  %s2583_s18 = sshll.u32 (!%p268_p9), %s2648_s17, 4  ;;  %s2584_s18 = int_to_ptr.vmem [resolvable:$false] %s2583_s18 }
  0x14   : > { %v2484_v21 = vld [vmem:[%s3260_s0 + $0x98] sm:$0xff] (!%p268_p9)   ;;  %v2485_v22 = vld [vmem:[%s3260_s0 + $0xa0] sm:$0xff] (!%p268_p9)   ;;  %v2486_v23 = vld [vmem:[%s3260_s0 + $0xa8] sm:$0xff] (!%p268_p9)  }
  0x15   : > { %v2487_v24 = vld [vmem:[%s3260_s0 + $0xb0] sm:$0xff]   ;;  %v2488_v25 = vld [vmem:[%s3260_s0 + $0xb8] sm:$0xff]   ;;  %v2489_v26 = vld [vmem:[%s3260_s0 + $0xc0] sm:$0xff]   ;;  %s3276_s20 = smov (!%p303_p10, %s1990_s20), 31 }
  0x16   : > { %2348 = vmatmul.mubr.msk.bf16.vlgmr.msra.gmra.mrb[0].mxu0 %vm557_vm0, %v2466_v3  ;;  %v2490_v27 = vld [vmem:[%s3260_s0 + $0xc8] sm:$0xff]   ;;  %v2491_v28 = vld [vmem:[%s3260_s0 + $0xd0] sm:$0xff]   ;;  %v2492_v29 = vld [vmem:[%s3260_s0 + $0xd8] sm:$0xff]   ;;  %s2133_s21 = sshll.u32 %s3276_s20, 4  ;;  %s1989_s20 = sshll.u32 %s299_s19, 3 }
  0x17   : > { %2351 = vmatprep.mubr.msk.bf16.mxu0 %vm557_vm0, %v2467_v4  ;;  %v2493_v30 = vld [vmem:[%s3260_s0 + $0xe0] sm:$0xff]   ;;  %v2494_v31 = vld [vmem:[%s3260_s0 + $0xe8] sm:$0xff]   ;;  %v2495_v32 = vld [vmem:[%s3260_s0 + $0xf0] sm:$0xff]   ;;  %s2880_s24 = scalar_lea.vmem %s3263_s3, %s2133_s21  ;;  %s301_s26 = scalar_lea.vmem [#allocation3], %s1989_s20 }
  0x18   : > { %v2496_v33 = vld [vmem:[%s3260_s0 + $0xf8] sm:$0xff]   ;;  %v2499_v34 = vld [vmem:[%s2880_s24 + $0x4] ss:$16 sps:$4 sm:$0xff]   ;;  %v2886_v35 = vld [vmem:[%s3262_s2] ss:$0 sm:$0xff]  ;;  %s1926_s10 = sshll.u32 %s301_s26, 4  ;;  %s3220_s10 = int_to_ptr.vmem [resolvable:$true] %s1926_s10 }
  0x19   : > { %1263 = vmatprep.mubr.bf16.mxu1 %v2499_v34  ;;  %s2579_s9 = scalar_lea.vmem %s3220_s10, 128  ;;  %s2585_s20 = scalar_lea.vmem %s2584_s18, 256 }
  0x1a   : > { %p2580_p11 = scmp.ne.s32.totalorder %s3220_s10, %s2579_s9  ;;  %p2586_p0 = scmp.lt.s32.totalorder %s3220_s10, %s2584_s18 }
  0x1b   : > { %p2587_p1 = scmp.lt.s32.totalorder %s2585_s20, %s2579_s9 }
  0x1c   : > { %p2581_p12 = pnand %p2580_p11, %p2732_p5 }
  0x1d   : > { %p2588_p2 = por %p2587_p1, %p2586_p0 }
  0x1e   : > { %2352 = vmatmul.mubr.msk.bf16.gmra.mrb[4].mxu0 %vm557_vm0, %v2468_v5  ;;  %p2582_p13 = pneg %p2581_p12 }
  0x1f   : > { %2355 = vmatprep.mubr.msk.bf16.mxu0 %vm557_vm0, %v2469_v6 }
  0x20   : > { %p2589_p3 = pnand %p2588_p2, %p2582_p13 }
  0x26   : > { %2356 = vmatmul.mubr.msk.bf16.gmra.mrb[8].mxu0 %vm557_vm0, %v2470_v7 }
  0x27   : > { %2359 = vmatprep.mubr.msk.bf16.mxu0 %vm557_vm0, %v2471_v8 }
  0x2e   : > { %2360 = vmatmul.mubr.msk.bf16.gmra.mrb[12].mxu0 %vm557_vm0, %v2472_v9 }
  0x2f   : > { %2363 = vmatprep.mubr.msk.bf16.mxu0 %vm557_vm0, %v2473_v10 }
  0x36   : > { %2364 = vmatmul.mubr.msk.bf16.gmra.mrb[16].mxu0 %vm557_vm0, %v2474_v11 }
  0x37   : > { %2367 = vmatprep.mubr.msk.bf16.mxu0 %vm557_vm0, %v2475_v12 }
  0x3e   : > { %2368 = vmatmul.mubr.msk.bf16.gmra.mrb[20].mxu0 %vm557_vm0, %v2476_v13 }
  0x3f   : > { %2371 = vmatprep.mubr.msk.bf16.mxu0 %vm557_vm0, %v2477_v14 }
  0x46   : > { %2372 = vmatmul.mubr.msk.bf16.gmra.mrb[24].mxu0 %vm557_vm0, %v2478_v15 }
  0x47   : > { %2375 = vmatprep.mubr.msk.bf16.mxu0 %vm557_vm0, %v2479_v16 }
  0x4e   : > { %2376 = vmatmul.mubr.msk.bf16.gmra.mrb[28].mxu0 %vm557_vm0, %v2480_v17 }
  0x4f   : > { %2379 = vmatprep.mubr.msk.bf16.mxu0 %vm557_vm0, %v2481_v18 }
  0x56   : > { %2380 = vmatmul.mubr.msk.bf16.gmra.mrb[32].mxu0 %vm557_vm0, %v2482_v19 }
  0x57   : > { %2383 = vmatprep.mubr.msk.bf16.mxu0 %vm557_vm0, %v2483_v20 }
  0x5e   : > { %2384 = vmatmul.mubr.msk.bf16.gmra.mrb[36].mxu0 %vm557_vm0, %v2484_v21 }
  0x5f   : > { %2387 = vmatprep.mubr.msk.bf16.mxu0 %vm557_vm0, %v2485_v22 }
  0x66   : > { %2388 = vmatmul.mubr.msk.bf16.gmra.mrb[40].mxu0 %vm557_vm0, %v2486_v23 }
  0x67   : > { %2391 = vmatprep.mubr.msk.bf16.mxu0 %vm557_vm0, %v2487_v24 }
  0x6e   : > { %2392 = vmatmul.mubr.msk.bf16.gmra.mrb[44].mxu0 %vm557_vm0, %v2488_v25 }
  0x6f   : > { %2395 = vmatprep.mubr.msk.bf16.mxu0 %vm557_vm0, %v2489_v26 }
  0x76   : > { %2396 = vmatmul.mubr.msk.bf16.gmra.mrb[48].mxu0 %vm557_vm0, %v2490_v27 }
  0x77   : > { %2399 = vmatprep.mubr.msk.bf16.mxu0 %vm557_vm0, %v2491_v28 }
  0x7e   : > { %2400 = vmatmul.mubr.msk.bf16.gmra.mrb[52].mxu0 %vm557_vm0, %v2492_v29 }
  0x7f   : > { %2403 = vmatprep.mubr.msk.bf16.mxu0 %vm557_vm0, %v2493_v30 }
  0x86   : > { %2404 = vmatmul.mubr.msk.bf16.gmra.mrb[56].mxu0 %vm557_vm0, %v2494_v31 }
  0x87   : > { %2407 = vmatprep.mubr.msk.bf16.mxu0 %vm557_vm0, %v2495_v32 }
  0x8e   : > { %2408 = vmatmul.mubr.msk.bf16.gmra.mrb[60].mxu0 %vm557_vm0, %v2496_v33 }
  0xe9   : > { %v2349_v36 = vpop.f32.mrb[0].mxu0 }
  0xea   : > { %v697_v37 = vadd.f32 %v2349_v36, %v2886_v35  ;;  %v688_v38 = vpop.f32.mrb[1].mxu0 }
  0xeb   : > { %v689_v39 = vadd.f32 %v2886_v35, %v688_v38  ;;  %v2350_v40 = vpop.f32.mrb[2].mxu0 }
  0xec   : > { %v700_v41 = vadd.f32 %v2350_v40, %v2886_v35  ;;  %v691_v42 = vpop.f32.mrb[3].mxu0  ;;  %v945_v44 = vmax.f32 %v697_v37, 0.0 }
  0xed   : > { %v692_v43 = vadd.f32 %v2886_v35, %v691_v42  ;;  %v943_v46 = vmax.f32 %v689_v39, 0.0 }
  0xee   : > { %v946_v45 = vmax.f32 %v700_v41, 0.0 }
  0xef   : > { %v944_v47 = vmax.f32 %v692_v43, 0.0 }
  0xf0   : > { %v2892_v48 = vpack.c.bf16 %v946_v45, %v945_v44 }
  0xf1   : > { %v2353_v49 = vpop.f32.mrb[4].mxu0  ;;  %v2894_v50 = vpack.c.bf16 %v944_v47, %v943_v46 }
  0xf2   : > { %v713_v51 = vadd.f32 %v2353_v49, %v2886_v35  ;;  %v704_v52 = vpop.f32.mrb[5].mxu0 }
  0xf3   : > { %v705_v53 = vadd.f32 %v2886_v35, %v704_v52  ;;  %v2354_v54 = vpop.f32.mrb[6].mxu0 }
  0xf4   : > { %v716_v55 = vadd.f32 %v2354_v54, %v2886_v35  ;;  %v707_v56 = vpop.f32.mrb[7].mxu0  ;;  %v949_v58 = vmax.f32 %v713_v51, 0.0 }
  0xf5   : > { %v708_v57 = vadd.f32 %v2886_v35, %v707_v56  ;;  %v947_v60 = vmax.f32 %v705_v53, 0.0 }
  0xf6   : > { %v950_v59 = vmax.f32 %v716_v55, 0.0 }
  0xf7   : > { %v948_v61 = vmax.f32 %v708_v57, 0.0 }
  0xf8   : > { %v2900_v62 = vpack.c.bf16 %v950_v59, %v949_v58 }
  0xf9   : > { %v2902_v63 = vpack.c.bf16 %v948_v61, %v947_v60  ;;  %v2357_v0 = vpop.f32.mrb[8].mxu0 }
  0xfa   : > { %v729_v1 = vadd.f32 %v2357_v0, %v2886_v35  ;;  %v720_v2 = vpop.f32.mrb[9].mxu0 }
  0xfb   : > { %v721_v3 = vadd.f32 %v2886_v35, %v720_v2  ;;  %v2358_v4 = vpop.f32.mrb[10].mxu0 }
  0xfc   : > { %v732_v5 = vadd.f32 %v2358_v4, %v2886_v35  ;;  %v723_v6 = vpop.f32.mrb[11].mxu0  ;;  %v953_v8 = vmax.f32 %v729_v1, 0.0 }
  0xfd   : > { %v724_v7 = vadd.f32 %v2886_v35, %v723_v6  ;;  %v951_v10 = vmax.f32 %v721_v3, 0.0 }
  0xfe   : > { %v954_v9 = vmax.f32 %v732_v5, 0.0 }
  0xff   : > { %v952_v11 = vmax.f32 %v724_v7, 0.0 }
 0x100   : > { %v2908_v12 = vpack.c.bf16 %v954_v9, %v953_v8 }
 0x101   : > { %v2910_v13 = vpack.c.bf16 %v952_v11, %v951_v10  ;;  %v2361_v14 = vpop.f32.mrb[12].mxu0 }
 0x102   : > { %v745_v15 = vadd.f32 %v2361_v14, %v2886_v35  ;;  %v736_v16 = vpop.f32.mrb[13].mxu0 }
 0x103   : > { %v737_v17 = vadd.f32 %v2886_v35, %v736_v16  ;;  %v2362_v18 = vpop.f32.mrb[14].mxu0 }
 0x104   : > { %v748_v19 = vadd.f32 %v2362_v18, %v2886_v35  ;;  %v739_v20 = vpop.f32.mrb[15].mxu0  ;;  %v957_v22 = vmax.f32 %v745_v15, 0.0 }
 0x105   : > { %v740_v21 = vadd.f32 %v2886_v35, %v739_v20  ;;  %v955_v24 = vmax.f32 %v737_v17, 0.0 }
 0x106   : > { %v958_v23 = vmax.f32 %v748_v19, 0.0 }
 0x107   : > { %v956_v25 = vmax.f32 %v740_v21, 0.0 }
 0x108   : > { %v2916_v26 = vpack.c.bf16 %v958_v23, %v957_v22 }
 0x109   : > { %v2918_v27 = vpack.c.bf16 %v956_v25, %v955_v24  ;;  %v2365_v28 = vpop.f32.mrb[16].mxu0 }
 0x10a   : > { %v761_v29 = vadd.f32 %v2365_v28, %v2886_v35  ;;  %v752_v30 = vpop.f32.mrb[17].mxu0 }
 0x10b   : > { %v753_v31 = vadd.f32 %v2886_v35, %v752_v30  ;;  %v2366_v32 = vpop.f32.mrb[18].mxu0 }
 0x10c   : > { %v764_v33 = vadd.f32 %v2366_v32, %v2886_v35  ;;  %v755_v34 = vpop.f32.mrb[19].mxu0  ;;  %v961_v37 = vmax.f32 %v761_v29, 0.0 }
 0x10d   : > { %v756_v36 = vadd.f32 %v2886_v35, %v755_v34  ;;  %v959_v39 = vmax.f32 %v753_v31, 0.0 }
 0x10e   : > { %v962_v38 = vmax.f32 %v764_v33, 0.0 }
 0x10f   : > { %v960_v40 = vmax.f32 %v756_v36, 0.0  ;;  %v2497_v36 = vld [vmem:[%s2880_s24] ss:$16 sps:$4 sm:$0xff]  }
 0x110   : > { %v1016_v41 = vpack.c.bf16 %v962_v38, %v961_v37  ;;  %v2500_v38 = vld [vmem:[%s2880_s24 + $0x24] ss:$16 sps:$4 sm:$0xff]  }
 0x111   : > { %v2369_v42 = vpop.f32.mrb[20].mxu0  ;;  %v1015_v43 = vpack.c.bf16 %v960_v40, %v959_v39 }
 0x112   : > { %v777_v44 = vadd.f32 %v2369_v42, %v2886_v35  ;;  %v768_v45 = vpop.f32.mrb[21].mxu0 }
 0x113   : > { %v769_v46 = vadd.f32 %v2886_v35, %v768_v45  ;;  %v2370_v47 = vpop.f32.mrb[22].mxu0  ;;  %2168 = vmatprep.subr.bf16.mxu1 %v1015_v43 }
 0x114   : > { %v780_v49 = vadd.f32 %v2370_v47, %v2886_v35  ;;  %v771_v51 = vpop.f32.mrb[23].mxu0  ;;  %2169 = vmatpush3.bf16.msra.mxu1 %v2894_v50  ;;  %v965_v53 = vmax.f32 %v777_v44, 0.0 }
 0x115   : > { %v772_v52 = vadd.f32 %v2886_v35, %v771_v51  ;;  %2170 = vmatprep.subr.bf16.mxu1 %v1016_v41  ;;  %v963_v55 = vmax.f32 %v769_v46, 0.0 }
 0x116   : > { %v966_v54 = vmax.f32 %v780_v49, 0.0 }
 0x117   : > { %v964_v56 = vmax.f32 %v772_v52, 0.0  ;;  %v2502_v52 = vld [vmem:[%s2880_s24 + $0x20] ss:$16 sps:$4 sm:$0xff]  }
 0x118   : > { %v1018_v57 = vpack.c.bf16 %v966_v54, %v965_v53  ;;  %2171 = vmatpush3.bf16.msra.mxu1 %v2892_v48  ;;  %v2503_v54 = vld [vmem:[%s2880_s24 + $0x44] ss:$16 sps:$4 sm:$0xff]  }
 0x119   : > { %v1017_v58 = vpack.c.bf16 %v964_v56, %v963_v55  ;;  %v2373_v59 = vpop.f32.mrb[24].mxu0 }
 0x11a   : > { %v793_v60 = vadd.f32 %v2373_v59, %v2886_v35  ;;  %v784_v61 = vpop.f32.mrb[25].mxu0 }
 0x11b   : > { %v785_v0 = vadd.f32 %v2886_v35, %v784_v61  ;;  %v2374_v1 = vpop.f32.mrb[26].mxu0  ;;  %2172 = vmatprep.subr.bf16.mxu1 %v1017_v58 }
 0x11c   : > { %v796_v50 = vadd.f32 %v2374_v1, %v2886_v35  ;;  %v787_v2 = vpop.f32.mrb[27].mxu0  ;;  %2173 = vmatpush3.bf16.msra.mxu1 %v2902_v63  ;;  %v969_v4 = vmax.f32 %v793_v60, 0.0 }
 0x11d   : > { %v788_v3 = vadd.f32 %v2886_v35, %v787_v2  ;;  %2174 = vmatprep.subr.bf16.mxu1 %v1018_v57  ;;  %v967_v48 = vmax.f32 %v785_v0, 0.0 }
 0x11e   : > { %v970_v5 = vmax.f32 %v796_v50, 0.0 }
 0x11f   : > { %v968_v6 = vmax.f32 %v788_v3, 0.0 }
 0x120   : > { %v1020_v7 = vpack.c.bf16 %v970_v5, %v969_v4  ;;  %2175 = vmatpush3.bf16.msra.mxu1 %v2900_v62  ;;  %v2505_v5 = vld [vmem:[%s2880_s24 + $0x40] ss:$16 sps:$4 sm:$0xff]  }
 0x121   : > { %v1019_v8 = vpack.c.bf16 %v968_v6, %v967_v48  ;;  %v2377_v9 = vpop.f32.mrb[28].mxu0  ;;  %v2506_v6 = vld [vmem:[%s2880_s24 + $0x64] ss:$16 sps:$4 sm:$0xff]  }
 0x122   : > { %v809_v10 = vadd.f32 %v2377_v9, %v2886_v35  ;;  %v800_v11 = vpop.f32.mrb[29].mxu0 }
 0x123   : > { %v801_v14 = vadd.f32 %v2886_v35, %v800_v11  ;;  %v2378_v15 = vpop.f32.mrb[30].mxu0  ;;  %2176 = vmatprep.subr.bf16.mxu1 %v1019_v8 }
 0x124   : > { %v812_v63 = vadd.f32 %v2378_v15, %v2886_v35  ;;  %v803_v16 = vpop.f32.mrb[31].mxu0  ;;  %2177 = vmatpush3.bf16.msra.mxu1 %v2910_v13  ;;  %v973_v18 = vmax.f32 %v809_v10, 0.0 }
 0x125   : > { %v804_v17 = vadd.f32 %v2886_v35, %v803_v16  ;;  %2178 = vmatprep.subr.bf16.mxu1 %v1020_v7  ;;  %v971_v62 = vmax.f32 %v801_v14, 0.0 }
 0x126   : > { %v974_v19 = vmax.f32 %v812_v63, 0.0 }
 0x127   : > { %v972_v20 = vmax.f32 %v804_v17, 0.0 }
 0x128   : > { %v1022_v21 = vpack.c.bf16 %v974_v19, %v973_v18  ;;  %2179 = vmatpush3.bf16.msra.mxu1 %v2908_v12 }
 0x129   : > { %v1021_v22 = vpack.c.bf16 %v972_v20, %v971_v62  ;;  %v2381_v23 = vpop.f32.mrb[32].mxu0  ;;  %v2508_v20 = vld [vmem:[%s2880_s24 + $0x60] ss:$16 sps:$4 sm:$0xff]  }
 0x12a   : > { %v825_v24 = vadd.f32 %v2381_v23, %v2886_v35  ;;  %v816_v25 = vpop.f32.mrb[33].mxu0 }
 0x12b   : > { %v817_v28 = vadd.f32 %v2886_v35, %v816_v25  ;;  %v2382_v13 = vpop.f32.mrb[34].mxu0  ;;  %2180 = vmatprep.subr.bf16.mxu1 %v1021_v22  ;;  %v2509_v22 = vld [vmem:[%s2880_s24 + $0x84] ss:$16 sps:$4 sm:$0xff]  }
 0x12c   : > { %v828_v29 = vadd.f32 %v2382_v13, %v2886_v35  ;;  %v819_v30 = vpop.f32.mrb[35].mxu0  ;;  %2181 = vmatpush3.bf16.msra.mxu1 %v2918_v27  ;;  %v977_v12 = vmax.f32 %v825_v24, 0.0 }
 0x12d   : > { %v820_v31 = vadd.f32 %v2886_v35, %v819_v30  ;;  %2182 = vmatprep.subr.bf16.mxu1 %v1022_v21  ;;  %v975_v33 = vmax.f32 %v817_v28, 0.0 }
 0x12e   : > { %v978_v32 = vmax.f32 %v828_v29, 0.0 }
 0x12f   : > { %v976_v34 = vmax.f32 %v820_v31, 0.0 }
 0x130   : > { %v2948_v37 = vpack.c.bf16 %v978_v32, %v977_v12  ;;  %2183 = vmatpush3.bf16.msra.mxu1 %v2916_v26 }
 0x131   : > { %v2952_v39 = vpack.c.bf16 %v976_v34, %v975_v33  ;;  %v2385_v40 = vpop.f32.mrb[36].mxu0 }
 0x132   : > { %v841_v27 = vadd.f32 %v2385_v40, %v2886_v35  ;;  %v832_v41 = vpop.f32.mrb[37].mxu0 }
 0x133   : > { %v833_v42 = vadd.f32 %v2886_v35, %v832_v41  ;;  %v2386_v43 = vpop.f32.mrb[38].mxu0  ;;  %1264 = vmatmul.mubr.bf16.vlgmr.msra.gmra.mrb[0].mxu1 %v2497_v36 }
 0x134   : > { %v844_v44 = vadd.f32 %v2386_v43, %v2886_v35  ;;  %v835_v45 = vpop.f32.mrb[39].mxu0  ;;  %1271 = vmatprep.mubr.bf16.mxu1 %v2500_v38  ;;  %v981_v26 = vmax.f32 %v841_v27, 0.0  ;;  %v2511_v38 = vld [vmem:[%s2880_s24 + $0x80] ss:$16 sps:$4 sm:$0xff]   ;;  %v2512_v27 = vld [vmem:[%s2880_s24 + $0xa4] ss:$16 sps:$4 sm:$0xff]  }
 0x135   : > { %v836_v46 = vadd.f32 %v2886_v35, %v835_v45  ;;  %v979_v49 = vmax.f32 %v833_v42, 0.0 }
 0x136   : > { %v982_v47 = vmax.f32 %v844_v44, 0.0 }
 0x137   : > { %v980_v51 = vmax.f32 %v836_v46, 0.0 }
 0x138   : > { %v2959_v53 = vpack.c.bf16 %v982_v47, %v981_v26 }
 0x139   : > { %v2962_v55 = vpack.c.bf16 %v980_v51, %v979_v49  ;;  %v2389_v56 = vpop.f32.mrb[40].mxu0 }
 0x13a   : > { %v857_v57 = vadd.f32 %v2389_v56, %v2886_v35  ;;  %v848_v58 = vpop.f32.mrb[41].mxu0 }
 0x13b   : > { %v849_v59 = vadd.f32 %v2886_v35, %v848_v58  ;;  %v2390_v60 = vpop.f32.mrb[42].mxu0  ;;  %1272 = vmatmul.mubr.bf16.gmra.mrb[4].mxu1 %v2502_v52 }
 0x13c   : > { %v860_v61 = vadd.f32 %v2390_v60, %v2886_v35  ;;  %v851_v0 = vpop.f32.mrb[43].mxu0  ;;  %1279 = vmatprep.mubr.bf16.mxu1 %v2503_v54  ;;  %v985_v50 = vmax.f32 %v857_v57, 0.0  ;;  %v2514_v57 = vld [vmem:[%s2880_s24 + $0xa0] ss:$16 sps:$4 sm:$0xff]  }
 0x13d   : > { %v852_v1 = vadd.f32 %v2886_v35, %v851_v0  ;;  %v983_v3 = vmax.f32 %v849_v59, 0.0  ;;  %v2515_v59 = vld [vmem:[%s2880_s24 + $0xc4] ss:$16 sps:$4 sm:$0xff]  }
 0x13e   : > { %v986_v2 = vmax.f32 %v860_v61, 0.0 }
 0x13f   : > { %v984_v4 = vmax.f32 %v852_v1, 0.0 }
 0x140   : > { %v2969_v48 = vpack.c.bf16 %v986_v2, %v985_v50 }
 0x141   : > { %v2972_v7 = vpack.c.bf16 %v984_v4, %v983_v3  ;;  %v2393_v8 = vpop.f32.mrb[44].mxu0 }
 0x142   : > { %v873_v9 = vadd.f32 %v2393_v8, %v2886_v35  ;;  %v864_v10 = vpop.f32.mrb[45].mxu0 }
 0x143   : > { %v865_v11 = vadd.f32 %v2886_v35, %v864_v10  ;;  %v2394_v14 = vpop.f32.mrb[46].mxu0  ;;  %1280 = vmatmul.mubr.bf16.gmra.mrb[8].mxu1 %v2505_v5 }
 0x144   : > { %v876_v15 = vadd.f32 %v2394_v14, %v2886_v35  ;;  %v867_v63 = vpop.f32.mrb[47].mxu0  ;;  %1287 = vmatprep.mubr.bf16.mxu1 %v2506_v6  ;;  %v989_v17 = vmax.f32 %v873_v9, 0.0  ;;  %v2517_v9 = vld [vmem:[%s2880_s24 + $0xc0] ss:$16 sps:$4 sm:$0xff]  }
 0x145   : > { %v868_v16 = vadd.f32 %v2886_v35, %v867_v63  ;;  %v987_v19 = vmax.f32 %v865_v11, 0.0  ;;  %v2518_v11 = vld [vmem:[%s2880_s24 + $0xe4] ss:$16 sps:$4 sm:$0xff]  }
 0x146   : > { %v990_v18 = vmax.f32 %v876_v15, 0.0 }
 0x147   : > { %v988_v62 = vmax.f32 %v868_v16, 0.0 }
 0x148   : > { %v2979_v21 = vpack.c.bf16 %v990_v18, %v989_v17 }
 0x149   : > { %v2982_v23 = vpack.c.bf16 %v988_v62, %v987_v19  ;;  %v2397_v24 = vpop.f32.mrb[48].mxu0 }
 0x14a   : > { %v889_v25 = vadd.f32 %v2397_v24, %v2886_v35  ;;  %v880_v28 = vpop.f32.mrb[49].mxu0 }
 0x14b   : > { %v881_v13 = vadd.f32 %v2886_v35, %v880_v28  ;;  %v2398_v29 = vpop.f32.mrb[50].mxu0  ;;  %1288 = vmatmul.mubr.bf16.gmra.mrb[12].mxu1 %v2508_v20 }
 0x14c   : > { %v892_v30 = vadd.f32 %v2398_v29, %v2886_v35  ;;  %v883_v31 = vpop.f32.mrb[51].mxu0  ;;  %1295 = vmatprep.mubr.bf16.mxu1 %v2509_v22  ;;  %v993_v32 = vmax.f32 %v889_v25, 0.0  ;;  %v2520_v25 = vld [vmem:[%s2880_s24 + $0xe0] ss:$16 sps:$4 sm:$0xff]  }
 0x14d   : > { %v884_v12 = vadd.f32 %v2886_v35, %v883_v31  ;;  %v991_v34 = vmax.f32 %v881_v13, 0.0  ;;  %v2523_v13 = vld [vmem:[%s2880_s24 + $0xc] ss:$16 sps:$4 sm:$0xff]   ;;  %v2529_v31 = vld [vmem:[%s2880_s24 + $0x48] ss:$16 sps:$4 sm:$0xff]  }
 0x14e   : > { %v994_v33 = vmax.f32 %v892_v30, 0.0  ;;  %v2527_v30 = vld [vmem:[%s2880_s24 + $0x4c] ss:$16 sps:$4 sm:$0xff]  }
 0x14f   : > { %v992_v36 = vmax.f32 %v884_v12, 0.0  ;;  %v2532_v12 = vld [vmem:[%s2880_s24 + $0x68] ss:$16 sps:$4 sm:$0xff]  }
 0x150   : > { %v1032_v40 = vpack.c.bf16 %v994_v33, %v993_v32  ;;  %v2535_v32 = vld [vmem:[%s2880_s24 + $0x88] ss:$16 sps:$4 sm:$0xff]   ;;  %v2536_v33 = vld [vmem:[%s2880_s24 + $0xac] ss:$16 sps:$4 sm:$0xff]  }
 0x151   : > { %v1031_v41 = vpack.c.bf16 %v992_v36, %v991_v34  ;;  %v2401_v42 = vpop.f32.mrb[52].mxu0  ;;  %v2538_v34 = vld [vmem:[%s2880_s24 + $0xa8] ss:$16 sps:$4 sm:$0xff]   ;;  %v2539_v36 = vld [vmem:[%s2880_s24 + $0xcc] ss:$16 sps:$4 sm:$0xff]  }
 0x152   : > { %v905_v43 = vadd.f32 %v2401_v42, %v2886_v35  ;;  %v896_v44 = vpop.f32.mrb[53].mxu0 }
 0x153   : > { %v897_v45 = vadd.f32 %v2886_v35, %v896_v44  ;;  %v2402_v46 = vpop.f32.mrb[54].mxu0  ;;  %1296 = vmatmul.mubr.bf16.gmra.mrb[16].mxu1 %v2511_v38  ;;  %2232 = vmatprep.subr.bf16.mxu1 %v1031_v41  ;;  %v2541_v38 = vld [vmem:[%s2880_s24 + $0xc8] ss:$16 sps:$4 sm:$0xff]  }
 0x154   : > { %v908_v26 = vadd.f32 %v2402_v46, %v2886_v35  ;;  %v899_v47 = vpop.f32.mrb[55].mxu0  ;;  %2233 = vmatpush3.bf16.msra.mxu1 %v2952_v39  ;;  %1303 = vmatprep.mubr.bf16.mxu1 %v2512_v27  ;;  %v997_v51 = vmax.f32 %v905_v43, 0.0  ;;  %v2544_v27 = vld [vmem:[%s2880_s24 + $0xe8] ss:$16 sps:$4 sm:$0xff]   ;;  %v2546_v46 = vld [vmem:[%s3264_s4] sm:$0xff]  }
 0x155   : > { %v900_v49 = vadd.f32 %v2886_v35, %v899_v47  ;;  %2234 = vmatprep.subr.bf16.mxu1 %v1032_v40  ;;  %v995_v54 = vmax.f32 %v897_v45, 0.0  ;;  %v2542_v40 = vld [vmem:[%s2880_s24 + $0xec] ss:$16 sps:$4 sm:$0xff]   ;;  %v2545_v45 = vld [vmem:[%s3264_s4 + $0x40] sm:$0xff]  }
 0x156   : > { %v998_v52 = vmax.f32 %v908_v26, 0.0  ;;  %v2547_v26 = vld [vmem:[%s3264_s4 + $0x48] sm:$0xff]   ;;  %2296 = vmatprep.subr.bf16.mxu0 %v2545_v45 }
 0x157   : > { %v996_v56 = vmax.f32 %v900_v49, 0.0  ;;  %2297 = vmatpush3.bf16.msra.mxu0 %v2546_v46 }
 0x158   : > { %v1034_v58 = vpack.c.bf16 %v998_v52, %v997_v51  ;;  %2235 = vmatpush3.bf16.msra.mxu1 %v2948_v37  ;;  %v2548_v51 = vld [vmem:[%s3264_s4 + $0x8] sm:$0xff]   ;;  %2298 = vmatprep.subr.bf16.mxu0 %v2547_v26  ;;  %v2554_v26 = vld [vmem:[%s3264_s4 + $0x20] sm:$0xff]  }
 0x159   : > { %v1033_v60 = vpack.c.bf16 %v996_v56, %v995_v54  ;;  %v2405_v61 = vpop.f32.mrb[56].mxu0 }
 0x15a   : > { %v921_v0 = vadd.f32 %v2405_v61, %v2886_v35  ;;  %v912_v1 = vpop.f32.mrb[57].mxu0 }
 0x15b   : > { %v913_v39 = vadd.f32 %v2886_v35, %v912_v1  ;;  %v2406_v50 = vpop.f32.mrb[58].mxu0  ;;  %1304 = vmatmul.mubr.bf16.gmra.mrb[20].mxu1 %v2514_v57  ;;  %2236 = vmatprep.subr.bf16.mxu1 %v1033_v60 }
 0x15c   : > { %v924_v2 = vadd.f32 %v2406_v50, %v2886_v35  ;;  %v915_v3 = vpop.f32.mrb[59].mxu0  ;;  %2237 = vmatpush3.bf16.msra.mxu1 %v2962_v55  ;;  %1311 = vmatprep.mubr.bf16.mxu1 %v2515_v59  ;;  %v1001_v4 = vmax.f32 %v921_v0, 0.0 }
 0x15d   : > { %v916_v37 = vadd.f32 %v2886_v35, %v915_v3  ;;  %2238 = vmatprep.subr.bf16.mxu1 %v1034_v58  ;;  %v999_v6 = vmax.f32 %v913_v39, 0.0  ;;  %2299 = vmatpush3.bf16.msra.mxu0 %v2548_v51 }
 0x15e   : > { %v1002_v5 = vmax.f32 %v924_v2, 0.0 }
 0x15f   : > { %v1000_v8 = vmax.f32 %v916_v37, 0.0 }
 0x160   : > { %v1036_v10 = vpack.c.bf16 %v1002_v5, %v1001_v4  ;;  %2239 = vmatpush3.bf16.msra.mxu1 %v2959_v53 }
 0x161   : > { %v1035_v14 = vpack.c.bf16 %v1000_v8, %v999_v6  ;;  %v2409_v15 = vpop.f32.mrb[60].mxu0 }
 0x162   : > { %v937_v63 = vadd.f32 %v2409_v15, %v2886_v35  ;;  %v928_v16 = vpop.f32.mrb[61].mxu0 }
 0x163   : > { %v929_v55 = vadd.f32 %v2886_v35, %v928_v16  ;;  %v2410_v17 = vpop.f32.mrb[62].mxu0  ;;  %1312 = vmatmul.mubr.bf16.gmra.mrb[24].mxu1 %v2517_v9  ;;  %2240 = vmatprep.subr.bf16.mxu1 %v1035_v14 }
 0x164   : > { %v940_v18 = vadd.f32 %v2410_v17, %v2886_v35  ;;  %v931_v19 = vpop.f32.mrb[63].mxu0  ;;  %2241 = vmatpush3.bf16.msra.mxu1 %v2972_v7  ;;  %1319 = vmatprep.mubr.bf16.mxu1 %v2518_v11  ;;  %v1005_v62 = vmax.f32 %v937_v63, 0.0  ;;  %v2524_v7 = vld [vmem:[%s2880_s24 + $0x2c] ss:$16 sps:$4 sm:$0xff]  }
 0x165   : > { %v932_v53 = vadd.f32 %v2886_v35, %v931_v19  ;;  %2242 = vmatprep.subr.bf16.mxu1 %v1036_v10  ;;  %v1003_v22 = vmax.f32 %v929_v55, 0.0  ;;  %v2521_v35 = vld [vmem:[%s2880_s24 + $0x8] ss:$16 sps:$4 sm:$0xff]  }
 0x166   : > { %v1006_v20 = vmax.f32 %v940_v18, 0.0 }
 0x167   : > { %v1004_v24 = vmax.f32 %v932_v53, 0.0 }
 0x168   : > { %v1038_v28 = vpack.c.bf16 %v1006_v20, %v1005_v62  ;;  %2243 = vmatpush3.bf16.msra.mxu1 %v2969_v48  ;;  %v2526_v48 = vld [vmem:[%s2880_s24 + $0x28] ss:$16 sps:$4 sm:$0xff]  }
 0x169   : > { %v1037_v29 = vpack.c.bf16 %v1004_v24, %v1003_v22 }
 0x16b   : > { %1320 = vmatmul.mubr.bf16.gmra.mrb[28].mxu1 %v2520_v25  ;;  %2244 = vmatprep.subr.bf16.mxu1 %v1037_v29 }
 0x16c   : > { %2245 = vmatpush3.bf16.msra.mxu1 %v2982_v23  ;;  %1360 = vmatprep.mubr.bf16.mxu1 %v2523_v13  ;;  %v2530_v23 = vld [vmem:[%s2880_s24 + $0x6c] ss:$16 sps:$4 sm:$0xff]  }
 0x16d   : > { %2246 = vmatprep.subr.bf16.mxu1 %v1038_v28 }
 0x170   : > { %2247 = vmatpush3.bf16.msra.mxu1 %v2979_v21  ;;  %v2533_v21 = vld [vmem:[%s2880_s24 + $0x8c] ss:$16 sps:$4 sm:$0xff]  }
 0x173   : > { %1361 = vmatmul.mubr.bf16.vlgmr.msra.gmra.mrb[32].mxu1 %v2521_v35 }
 0x174   : > { %1368 = vmatprep.mubr.bf16.mxu1 %v2524_v7 }
 0x17b   : > { %1369 = vmatmul.mubr.bf16.gmra.mrb[36].mxu1 %v2526_v48  ;;  %v2549_v48 = vld [vmem:[%s3264_s4 + $0x50] sm:$0xff]  }
 0x17c   : > { %1376 = vmatprep.mubr.bf16.mxu1 %v2527_v30  ;;  %v2550_v30 = vld [vmem:[%s3264_s4 + $0x10] sm:$0xff]   ;;  %2300 = vmatprep.subr.bf16.mxu0 %v2549_v48 }
 0x17d   : > { %2301 = vmatpush3.bf16.msra.mxu0 %v2550_v30  ;;  %v2566_v48 = vld [vmem:[%s3264_s4 + $0x90] sm:$0xff]  }
 0x183   : > { %1377 = vmatmul.mubr.bf16.gmra.mrb[40].mxu1 %v2529_v31 }
 0x184   : > { %1384 = vmatprep.mubr.bf16.mxu1 %v2530_v23 }
 0x18b   : > { %1385 = vmatmul.mubr.bf16.gmra.mrb[44].mxu1 %v2532_v12 }
 0x18c   : > { %1392 = vmatprep.mubr.bf16.mxu1 %v2533_v21 }
 0x193   : > { %1393 = vmatmul.mubr.bf16.gmra.mrb[48].mxu1 %v2535_v32 }
 0x194   : > { %1400 = vmatprep.mubr.bf16.mxu1 %v2536_v33 }
 0x19b   : > { %1401 = vmatmul.mubr.bf16.gmra.mrb[52].mxu1 %v2538_v34  ;;  %v2551_v34 = vld [vmem:[%s3264_s4 + $0x58] sm:$0xff]  }
 0x19c   : > { %1408 = vmatprep.mubr.bf16.mxu1 %v2539_v36  ;;  %2302 = vmatprep.subr.bf16.mxu0 %v2551_v34  ;;  %v2568_v34 = vld [vmem:[%s3264_s4 + $0x98] sm:$0xff]  }
 0x1a3   : > { %1409 = vmatmul.mubr.bf16.gmra.mrb[56].mxu1 %v2541_v38 }
 0x1a4   : > { %1416 = vmatprep.mubr.bf16.mxu1 %v2542_v40 }
 0x1ab   : > { %1417 = vmatmul.mubr.bf16.gmra.mrb[60].mxu1 %v2544_v27 }
 0x206   : > { %v2184_v41 = vpop.f32.mrb[0].mxu1 }
 0x207   : > { %v2185_v42 = vpop.f32.mrb[1].mxu1 }
 0x208   : > { %v3031_v43 = vadd.f32 %v2185_v42, %v2184_v41  ;;  %v2187_v44 = vpop.f32.mrb[2].mxu1  ;;  %v2552_v42 = vld [vmem:[%s3264_s4 + $0x18] sm:$0xff]  }
 0x209   : > { %v2188_v47 = vpop.f32.mrb[3].mxu1  ;;  %2303 = vmatpush3.bf16.msra.mxu0 %v2552_v42 }
 0x20a   : > { %v2189_v49 = vadd.f32 %v2188_v47, %v2187_v44 }
 0x20e   : > { %v2190_v52 = vpop.f32.mrb[4].mxu1 }
 0x20f   : > { %v2191_v54 = vpop.f32.mrb[5].mxu1 }
 0x210   : > { %v3045_v56 = vadd.f32 %v2191_v54, %v2190_v52  ;;  %v2193_v57 = vpop.f32.mrb[6].mxu1  ;;  %v2555_v54 = vld [vmem:[%s3264_s4 + $0x68] sm:$0xff]  }
 0x211   : > { %v2194_v58 = vpop.f32.mrb[7].mxu1 }
 0x212   : > { %v3047_v59 = vadd.f32 %v2194_v58, %v2193_v57 }
 0x216   : > { %v2196_v60 = vpop.f32.mrb[8].mxu1 }
 0x217   : > { %v2197_v61 = vpop.f32.mrb[9].mxu1 }
 0x218   : > { %v3049_v0 = vadd.f32 %v2197_v61, %v2196_v60  ;;  %v2199_v1 = vpop.f32.mrb[10].mxu1  ;;  %v2557_v61 = vld [vmem:[%s3264_s4 + $0x70] sm:$0xff]  }
 0x219   : > { %v2200_v39 = vpop.f32.mrb[11].mxu1 }
 0x21a   : > { %v3051_v50 = vadd.f32 %v2200_v39, %v2199_v1  ;;  %v2558_v1 = vld [vmem:[%s3264_s4 + $0x30] sm:$0xff]  }
 0x21e   : > { %v2202_v2 = vpop.f32.mrb[12].mxu1 }
 0x21f   : > { %v2203_v3 = vpop.f32.mrb[13].mxu1 }
 0x220   : > { %v3053_v37 = vadd.f32 %v2203_v3, %v2202_v2  ;;  %v2205_v4 = vpop.f32.mrb[14].mxu1  ;;  %v2559_v3 = vld [vmem:[%s3264_s4 + $0x78] sm:$0xff]  }
 0x221   : > { %v2206_v5 = vpop.f32.mrb[15].mxu1 }
 0x222   : > { %v3055_v6 = vadd.f32 %v2206_v5, %v2205_v4 }
 0x226   : > { %v2208_v8 = vpop.f32.mrb[16].mxu1 }
 0x227   : > { %v2209_v9 = vpop.f32.mrb[17].mxu1 }
 0x228   : > { %v3057_v10 = vadd.f32 %v2209_v9, %v2208_v8  ;;  %v2211_v11 = vpop.f32.mrb[18].mxu1 }
 0x229   : > { %v2212_v14 = vpop.f32.mrb[19].mxu1 }
 0x22a   : > { %v3059_v15 = vadd.f32 %v2212_v14, %v2211_v11 }
 0x22e   : > { %v2214_v63 = vpop.f32.mrb[20].mxu1 }
 0x22f   : > { %v2215_v16 = vpop.f32.mrb[21].mxu1 }
 0x230   : > { %v3061_v55 = vadd.f32 %v2215_v16, %v2214_v63  ;;  %v2217_v17 = vpop.f32.mrb[22].mxu1 }
 0x231   : > { %v2218_v18 = vpop.f32.mrb[23].mxu1 }
 0x232   : > { %v3063_v19 = vadd.f32 %v2218_v18, %v2217_v17  ;;  %v2562_v18 = vld [vmem:[%s3264_s4 + $0x80] sm:$0xff]  }
 0x236   : > { %v2220_v53 = vpop.f32.mrb[24].mxu1 }
 0x237   : > { %v2221_v62 = vpop.f32.mrb[25].mxu1 }
 0x238   : > { %v3065_v20 = vadd.f32 %v2221_v62, %v2220_v53  ;;  %v2223_v22 = vpop.f32.mrb[26].mxu1 }
 0x239   : > { %v2224_v24 = vpop.f32.mrb[27].mxu1 }
 0x23a   : > { %v3067_v25 = vadd.f32 %v2224_v24, %v2223_v22 }
 0x23e   : > { %v2226_v28 = vpop.f32.mrb[28].mxu1 }
 0x23f   : > { %v2227_v13 = vpop.f32.mrb[29].mxu1 }
 0x240   : > { %v3069_v29 = vadd.f32 %v2227_v13, %v2226_v28  ;;  %v2229_v35 = vpop.f32.mrb[30].mxu1  ;;  %v2565_v28 = vld [vmem:[%s3264_s4 + $0xd0] sm:$0xff]  }
 0x241   : > { %v2230_v7 = vpop.f32.mrb[31].mxu1 }
 0x242   : > { %v3077_v31 = vadd.f32 %v2230_v7, %v2229_v35 }
 0x246   : > { %v2248_v23 = vpop.f32.mrb[32].mxu1 }
 0x247   : > { %v2249_v12 = vpop.f32.mrb[33].mxu1 }
 0x248   : > { %v2250_v21 = vadd.f32 %v2249_v12, %v2248_v23  ;;  %v2251_v32 = vpop.f32.mrb[34].mxu1 }
 0x249   : > { %v2252_v33 = vpop.f32.mrb[35].mxu1 }
 0x24a   : > { %v1363_v36 = vadd.f32 %v2250_v21, %v3031_v43  ;;  %v2253_v38 = vadd.f32 %v2252_v33, %v2251_v32  ;;  %v2553_v43 = vld [vmem:[%s3264_s4 + $0x60] sm:$0xff]  }
 0x24b   : > { %2304 = vmatprep.subr.bf16.mxu0 %v2553_v43 }
 0x24c   : > { %1425 = vst.msk [vmem:[#allocation2] sm:$0xff] %vm557_vm0, %v1363_v36  ;;  %v1366_v40 = vadd.f32 %v2253_v38, %v2189_v49  ;;  %2305 = vmatpush3.bf16.msra.mxu0 %v2554_v26 }
 0x24d   : > { %2306 = vmatprep.subr.bf16.mxu0 %v2555_v54 }
 0x24e   : > { %v2254_v27 = vpop.f32.mrb[36].mxu1  ;;  %1427 = vrot.lane.b32.xlu0 %v1366_v40, %s2643_s12  ;;  %v2569_v40 = vld [vmem:[%s3264_s4 + $0xe0] sm:$0xff]  }
 0x24f   : > { %v2255_v41 = vpop.f32.mrb[37].mxu1 }
 0x250   : > { %v2256_v44 = vadd.f32 %v2255_v41, %v2254_v27  ;;  %v2257_v45 = vpop.f32.mrb[38].mxu1  ;;  %v2570_v27 = vld [vmem:[%s3264_s4 + $0xa0] sm:$0xff]  }
 0x251   : > { %v2258_v46 = vpop.f32.mrb[39].mxu1 }
 0x252   : > { %v2259_v47 = vadd.f32 %v2258_v46, %v2257_v45  ;;  %v1371_v49 = vadd.f32 %v2256_v44, %v3045_v56  ;;  %v2556_v56 = vld [vmem:[%s3264_s4 + $0x28] sm:$0xff]  }
 0x253   : > { %2307 = vmatpush3.bf16.msra.mxu0 %v2556_v56  ;;  %v2572_v46 = vld [vmem:[%s3264_s4 + $0xa8] sm:$0xff]  }
 0x254   : > { %v1374_v51 = vadd.f32 %v2259_v47, %v3047_v59  ;;  %1433 = vrot.lane.b32.xlu1 %v1371_v49, %s2644_s22  ;;  %2308 = vmatprep.subr.bf16.mxu0 %v2557_v61  ;;  %v2573_v47 = vld [vmem:[%s3264_s4 + $0xf0] sm:$0xff]  }
 0x255   : > { %v2574_v49 = vld [vmem:[%s3264_s4 + $0xb0] sm:$0xff]  }
 0x256   : > { %v2260_v52 = vpop.f32.mrb[40].mxu1  ;;  %1439 = vrot.lane.b32.xlu0 %v1374_v51, %s2645_s23 }
 0x257   : > { %v2261_v57 = vpop.f32.mrb[41].mxu1  ;;  %2309 = vmatpush3.bf16.msra.mxu0 %v2558_v1 }
 0x258   : > { %v2262_v58 = vadd.f32 %v2261_v57, %v2260_v52  ;;  %v2263_v60 = vpop.f32.mrb[42].mxu1  ;;  %2310 = vmatprep.subr.bf16.mxu0 %v2559_v3  ;;  %v2575_v52 = vld [vmem:[%s3264_s4 + $0xf8] sm:$0xff]  }
 0x259   : > { %v2264_v59 = vpop.f32.mrb[43].mxu1  ;;  %v2576_v57 = vld [vmem:[%s3264_s4 + $0xb8] sm:$0xff]  }
 0x25a   : > { %v1379_v39 = vadd.f32 %v2262_v58, %v3049_v0  ;;  %v2265_v2 = vadd.f32 %v2264_v59, %v2263_v60  ;;  %v2560_v0 = vld [vmem:[%s3264_s4 + $0x38] sm:$0xff]  }
 0x25b   : > { %2311 = vmatpush3.bf16.msra.mxu0 %v2560_v0 }
 0x25c   : > { %1444 = vst.msk [vmem:[#allocation2 + $0x8] sm:$0xff] %vm557_vm0, %v1379_v39  ;;  %v1382_v4 = vadd.f32 %v2265_v2, %v3051_v50  ;;  %v2561_v50 = vld [vmem:[%s3264_s4 + $0xc0] sm:$0xff]  }
 0x25d   : > { %2318 = vmatprep.subr.bf16.mxu1 %v2561_v50 }
 0x25e   : > { %v2266_v5 = vpop.f32.mrb[44].mxu1  ;;  %1446 = vrot.lane.b32.xlu0 %v1382_v4, %s2643_s12  ;;  %2319 = vmatpush3.bf16.msra.mxu1 %v2562_v18 }
 0x25f   : > { %v2267_v8 = vpop.f32.mrb[45].mxu1 }
 0x260   : > { %v2268_v9 = vadd.f32 %v2267_v8, %v2266_v5  ;;  %v2269_v11 = vpop.f32.mrb[46].mxu1 }
 0x261   : > { %v2270_v14 = vpop.f32.mrb[47].mxu1 }
 0x262   : > { %v1387_v63 = vadd.f32 %v2268_v9, %v3053_v37  ;;  %v2271_v16 = vadd.f32 %v2270_v14, %v2269_v11  ;;  %v2563_v37 = vld [vmem:[%s3264_s4 + $0xc8] sm:$0xff]  }
 0x263   : > { %2320 = vmatprep.subr.bf16.mxu1 %v2563_v37  ;;  %v2577_v37 = vld [vmem:[%s3266_s6] sm:$0xff]  }
 0x264   : > { %v1390_v17 = vadd.f32 %v2271_v16, %v3055_v6  ;;  %1451 = vrot.lane.b32.xlu1 %v1387_v63, %s2644_s22  ;;  %v2564_v6 = vld [vmem:[%s3264_s4 + $0x88] sm:$0xff]  }
 0x265   : > { %2321 = vmatpush3.bf16.msra.mxu1 %v2564_v6  ;;  %v2646_v6 = vmov 0.0  }
 0x266   : > { %v2272_v53 = vpop.f32.mrb[48].mxu1  ;;  %1456 = vrot.lane.b32.xlu0 %v1390_v17, %s2645_s23  ;;  %2322 = vmatprep.subr.bf16.mxu1 %v2565_v28 }
 0x267   : > { %v2273_v62 = vpop.f32.mrb[49].mxu1  ;;  %2411 = vmatprep.subr.bf16.mxu0 %v2646_v6 }
 0x268   : > { %v2274_v22 = vadd.f32 %v2273_v62, %v2272_v53  ;;  %v2275_v24 = vpop.f32.mrb[50].mxu1 }
 0x269   : > { %v2276_v13 = vpop.f32.mrb[51].mxu1  ;;  %2323 = vmatpush3.bf16.msra.mxu1 %v2566_v48  ;;  %v2092_v48 = vld [vmem:[%s3265_s5] ss:$0 sm:$0xff] }
 0x26a   : > { %v1395_v35 = vadd.f32 %v2274_v22, %v3057_v10  ;;  %v2277_v7 = vadd.f32 %v2276_v13, %v2275_v24  ;;  %v2567_v10 = vld [vmem:[%s3264_s4 + $0xd8] sm:$0xff]   ;;  %v2578_v22 = vld [vmem:[%s3266_s6 + $0x8] sm:$0xff]  }
 0x26b   : > { %2324 = vmatprep.subr.bf16.mxu1 %v2567_v10 }
 0x26c   : > { %1460 = vst.msk [vmem:[#allocation2 + $0x10] sm:$0xff] %vm557_vm0, %v1395_v35  ;;  %v1398_v30 = vadd.f32 %v2277_v7, %v3059_v15 }
 0x26d   : > { %2325 = vmatpush3.bf16.msra.mxu1 %v2568_v34 }
 0x26e   : > { %v2278_v23 = vpop.f32.mrb[52].mxu1  ;;  %1462 = vrot.lane.b32.xlu1 %v1398_v30, %s2643_s12  ;;  %2326 = vmatprep.subr.bf16.mxu1 %v2569_v40 }
 0x26f   : > { %v2279_v12 = vpop.f32.mrb[53].mxu1 }
 0x270   : > { %v2280_v21 = vadd.f32 %v2279_v12, %v2278_v23  ;;  %v2281_v32 = vpop.f32.mrb[54].mxu1 }
 0x271   : > { %v2282_v33 = vpop.f32.mrb[55].mxu1  ;;  %2327 = vmatpush3.bf16.msra.mxu1 %v2570_v27 }
 0x272   : > { %v1403_v36 = vadd.f32 %v2280_v21, %v3061_v55  ;;  %v2283_v15 = vadd.f32 %v2282_v33, %v2281_v32  ;;  %v2571_v55 = vld [vmem:[%s3264_s4 + $0xe8] sm:$0xff]  }
 0x273   : > { %2328 = vmatprep.subr.bf16.mxu1 %v2571_v55 }
 0x274   : > { %v1406_v38 = vadd.f32 %v2283_v15, %v3063_v19  ;;  %1467 = vrot.lane.b32.xlu1 %v1403_v36, %s2644_s22  ;;  %v2125_v15 = vld [vmem:[%s3267_s7] ss:$0 sm:$0xff] }
 0x275   : > { %2329 = vmatpush3.bf16.msra.mxu1 %v2572_v46 }
 0x276   : > { %v2284_v41 = vpop.f32.mrb[56].mxu1  ;;  %2330 = vmatprep.subr.bf16.mxu1 %v2573_v47 }
 0x277   : > { %v2285_v42 = vpop.f32.mrb[57].mxu1 }
 0x278   : > { %v2286_v44 = vadd.f32 %v2285_v42, %v2284_v41  ;;  %v2287_v19 = vpop.f32.mrb[58].mxu1 }
 0x279   : > { %v2288_v45 = vpop.f32.mrb[59].mxu1  ;;  %2331 = vmatpush3.bf16.msra.mxu1 %v2574_v49 }
 0x27a   : > { %v1411_v43 = vadd.f32 %v2286_v44, %v3065_v20  ;;  %v2289_v26 = vadd.f32 %v2288_v45, %v2287_v19  ;;  %2332 = vmatprep.subr.bf16.mxu1 %v2575_v52 }
 0x27c   : > { %1476 = vst.msk [vmem:[#allocation2 + $0x18] sm:$0xff] %vm557_vm0, %v1411_v43  ;;  %v1414_v51 = vadd.f32 %v2289_v26, %v3067_v25 }
 0x27d   : > { %2333 = vmatpush3.bf16.msra.mxu1 %v2576_v57 }
 0x27e   : > { %v2290_v20 = vpop.f32.mrb[60].mxu1  ;;  %1478 = vrot.lane.b32.xlu1 %v1414_v51, %s2643_s12 }
 0x27f   : > { %v2291_v54 = vpop.f32.mrb[61].mxu1 }
 0x280   : > { %v2292_v56 = vadd.f32 %v2291_v54, %v2290_v20  ;;  %v2293_v58 = vpop.f32.mrb[62].mxu1 }
 0x281   : > { %v2294_v60 = vpop.f32.mrb[63].mxu1 }
 0x282   : > { %v1419_v25 = vadd.f32 %v2292_v56, %v3069_v29  ;;  %v2295_v59 = vadd.f32 %v2294_v60, %v2293_v58  ;;  %1472 = vrot.lane.b32.xlu1 %v1406_v38, %s2645_s23 }
 0x284   : > { %v1422_v61 = vadd.f32 %v2295_v59, %v3077_v31  ;;  %1483 = vrot.lane.b32.xlu0 %v1419_v25, %s2644_s22 }
 0x288   : > { %1488 = vrot.lane.b32.xlu0 %v1422_v61, %s2645_s23  ;;  %s3218_s23 = scalar_lea.hbm %s3268_s8, %s2130_s25 }
 0x2c0   : > { %v1428_v1 = vpop.permute.xlu0 %1427 }
 0x2c1   : > { %1431 = vst.msk [vmem:[#allocation2] sm:$0xff] %vm1430_vm1, %v1428_v1 }
 0x2c6   : > { %v1434_v39 = vpop.permute.xlu1 %1433 }
 0x2c7   : > { %1437 = vst.msk [vmem:[#allocation2] sm:$0xff] %vm1436_vm2, %v1434_v39 }
 0x2c8   : > { %v1440_v29 = vpop.permute.xlu0 %1439 }
 0x2c9   : > { %1443 = vst.msk [vmem:[#allocation2] sm:$0xff] %vm1442_vm3, %v1440_v29 }
 0x2d0   : > { %v1447_v2 = vpop.permute.xlu0 %1446  ;;  %v1492_v4 = vld [vmem:[#allocation2] sm:$0xff] }
 0x2d1   : > { %1449 = vst.msk [vmem:[#allocation2 + $0x8] sm:$0xff] %vm1430_vm1, %v1447_v2  ;;  %v1496_v9 = vpack.c.bf16 %v1492_v4, %v1492_v4 }
 0x2d6   : > { %v1452_v31 = vpop.permute.xlu1 %1451 }
 0x2d7   : > { %1454 = vst.msk [vmem:[#allocation2 + $0x8] sm:$0xff] %vm1436_vm2, %v1452_v31 }
 0x2d8   : > { %v1457_v3 = vpop.permute.xlu0 %1456 }
 0x2d9   : > { %1459 = vst.msk [vmem:[#allocation2 + $0x8] sm:$0xff] %vm1442_vm3, %v1457_v3 }
 0x2e0   : > { %v1463_v5 = vpop.permute.xlu1 %1462  ;;  %v1493_v8 = vld [vmem:[#allocation2 + $0x8] sm:$0xff] }
 0x2e1   : > { %1465 = vst.msk [vmem:[#allocation2 + $0x10] sm:$0xff] %vm1430_vm1, %v1463_v5  ;;  %v1497_v0 = vpack.c.bf16 %v1493_v8, %v1493_v8 }
 0x2e3   : > { %1795 = vmatprep.mubr.bf16.mxu0 %v1497_v0 }
 0x2e4   : > { %1796 = vmatmul.mubr.bf16.vlgmr.msra.gmra.mrb[64].mxu0 %v1496_v9 }
 0x2e5   : > { %2412 = vmatpush3.bf16.msra.mxu0 %v2577_v37  ;;  %2415 = vmatprep.mubr.msk.bf16.mxu0 %vm2647_vm4, %v2646_v6 }
 0x2e6   : > { %v1468_v11 = vpop.permute.xlu1 %1467  ;;  %2413 = vmatprep.subr.bf16.mxu0 %v2646_v6 }
 0x2e7   : > { %1470 = vst.msk [vmem:[#allocation2 + $0x10] sm:$0xff] %vm1436_vm2, %v1468_v11 }
 0x2e9   : > { %2414 = vmatpush3.bf16.msra.mxu0 %v2578_v22 }
 0x2f0   : > { %v1479_v14 = vpop.permute.xlu1 %1478 }
 0x2f1   : > { %1481 = vst.msk [vmem:[#allocation2 + $0x18] sm:$0xff] %vm1430_vm1, %v1479_v14 }
 0x2f4   : > { %v1473_v63 = vpop.permute.xlu1 %1472 }
 0x2f5   : > { %1475 = vst.msk [vmem:[#allocation2 + $0x10] sm:$0xff] %vm1442_vm3, %v1473_v63 }
 0x2f6   : > { %v1484_v16 = vpop.permute.xlu0 %1483 }
 0x2f7   : > { %1486 = vst.msk [vmem:[#allocation2 + $0x18] sm:$0xff] %vm1436_vm2, %v1484_v16 }
 0x2fa   : > { %v1489_v17 = vpop.permute.xlu0 %1488 }
 0x2fb   : > { %1491 = vst.msk [vmem:[#allocation2 + $0x18] sm:$0xff] %vm1442_vm3, %v1489_v17 }
 0x2fc   : > { %v1494_v50 = vld [vmem:[#allocation2 + $0x10] sm:$0xff] }
 0x2fd   : > { %v1498_v62 = vpack.c.bf16 %v1494_v50, %v1494_v50 }
 0x302   : > { %v1495_v18 = vld [vmem:[#allocation2 + $0x18] sm:$0xff] }
 0x303   : > { %v1499_v53 = vpack.c.bf16 %v1495_v18, %v1495_v18 }
 0x305   : > { %1835 = vmatprep.mubr.bf16.mxu1 %v1499_v53 }
 0x306   : > { %1836 = vmatmul.mubr.bf16.vlgmr.msra.gmra.mrb[64].mxu1 %v1498_v62 }
 0x3b7   : > { %v2312_v24 = vpop.f32.mrb[64].mxu0 }
 0x3b8   : > { %v2313_v28 = vpop.f32.mrb[65].mxu0 }
 0x3b9   : > { %v2314_v13 = vadd.f32 %v2313_v28, %v2312_v24  ;;  %v2315_v35 = vpop.f32.mrb[66].mxu0 }
 0x3ba   : > { %v2316_v7 = vpop.f32.mrb[67].mxu0 }
 0x3bb   : > { %v1798_v12 = vadd.f32 %v2314_v13, %v2092_v48 }
 0x3d9   : > { %v2334_v30 = vpop.f32.mrb[64].mxu1 }
 0x3da   : > { %v2335_v23 = vpop.f32.mrb[65].mxu1 }
 0x3db   : > { %v2336_v21 = vadd.f32 %v2335_v23, %v2334_v30  ;;  %v2337_v32 = vpop.f32.mrb[66].mxu1 }
 0x3dc   : > { %v2338_v10 = vpop.f32.mrb[67].mxu1 }
 0x3dd   : > { %v1838_v33 = vadd.f32 %v2336_v21, %v1798_v12 }
 0x3df   : > { %v1843_v34 = vmax.f32 %v1838_v33, 0.0 }
 0x3e1   : > { %v1844_v36 = vpack.c.bf16 %v1843_v34, %v1843_v34 }
 0x3e3   : > { %2416 = vmatmul.mubr.msk.bf16.vlgmr.msra.gmra.mrb[68].mxu0 %vm557_vm0, %v1844_v36 }
 0x4b6   : > { %v1905_v38 = vpop.f32.mrb[68].mxu0 }
 0x4b7   : > { %v1906_v40 = vadd.f32 %v2125_v15, %v1905_v38  ;;  %v2417_v27 = vpop.f32.mrb[69].mxu0 }
 0x4b8   : > { %v1908_v41 = vpop.f32.mrb[70].mxu0 }
 0x4b9   : > { %1911 = vst [vmem:[%s301_s26] sm:$0xff] %v1906_v40  ;;  %v2418_v42 = vpop.f32.mrb[71].mxu0 }
 0x4ba   : > { %2592 = shalt.err (!%p2589_p3)
}
 0x4bb   : > { %s2593_s19 = scalar_lea.hbm %s3218_s23, 128  ;;  %s2597_s25 = scalar_lea.hbm %s3268_s8, 256 }
 0x4bc   : > { %p2594_p4 = scmp.ne.s32.totalorder %s3218_s23, %s2593_s19  ;;  %p2598_p9 = scmp.lt.u32.totalorder %s3218_s23, %s3268_s8 }
 0x4bd   : > { %p2599_p10 = scmp.lt.u32.totalorder %s2597_s25, %s2593_s19  ;;  %p2601_p12 = scmp.lt.u32.totalorder %s2593_s19, %s3218_s23 }
 0x4be   : > { %p2595_p7 = pnand %p2594_p4, %p2732_p5 }
 0x4bf   : > { %p2600_p11 = por %p2599_p10, %p2598_p9 }
 0x4c0   : > { %p2596_p8 = pneg %p2595_p7 }
 0x4c1   : > { %p2602_p13 = por %p2601_p12, %p2600_p11 }
 0x4c3   : > { %p2603_p0 = pnand %p2602_p13, %p2596_p8 }
 0x4c5   : > { %2606 = shalt.err (!%p2603_p0)
}
 0x4c6   : > { %2419 = dma.vmem_to_hbm [thread:$0]  (%p2732_p5), %s3220_s10, 128, %s3218_s23, %s1913_s13  }
 0x4c7 PF: > { %p2425_p1 = scmp.ge.s32.totalorder %s2641_s30, 2  ;;  %s1938_s22 = sand.u32 1, %s2629_s27  }
 0x4c8   : > { %s1939_s9 = scalar_lea.sflag [#allocation4], %s1938_s22 }
 0x4c9   : > { %p2422_p2 = pnand %p2425_p1, %p2736_p6 }
 0x4cb   : > { %2624 = dma.done.wait (!%p2422_p2), %s1939_s9, 128  }
 0x4cc   : > { %2626 = vsyncadd (!%p2422_p2), %s1939_s9, 4294967168  ;;  %p18_p3 = scmp.ge.s32.totalorder %s2719_s11, 4   ;;  %s3271_s27 = smov %s2633_s28 }
 0x4cd   : > { %s3272_s28 = smov %s2637_s29  ;;  %s3273_s29 = smov %s2730_s14 }
 0x4ce   : > { %s3274_s30 = smov %s2719_s11  ;;  %20 = sbr.rel (!%p18_p3) target bundleno = 3 (0x3), region = 87 }
 0x4d5   :  { %1944 = vsyncpa [#allocation4], 1 }
 0x4d6   :  { %1946 = vsyncpa [#allocation4 + $0x1], 1 }

</bundles_post_ra>
